<compile_context>
chip_gen: v5e
topology: v5e:2x2
jax: 0.10.0
libtpu: 0.0.40
codegen_flags: <defaults>
</compile_context>

<pallas_src>
import math

import jax
import jax.numpy as jnp
from jax.experimental import pallas as pl
from jax.experimental.pallas import tpu as pltpu

NUM_HEADS = 4
HIDDEN = 32
NUM_LAYERS = 2
SEQ = 8
BATCH = 2
LN_EPS = 1e-5


def _layernorm(x, g, b):
    mean = jnp.mean(x, axis=-1, keepdims=True)
    var = jnp.mean((x - mean) ** 2, axis=-1, keepdims=True)
    return (x - mean) * jax.lax.rsqrt(var + LN_EPS) * g + b


def encoder_kernel(x_ref, mask_ref, w_ref, bqkv_ref, vec_ref, fln_ref, o_ref):
    NS, E = x_ref.shape                 # token-major rows: (batch n, seq s)
    S = mask_ref.shape[0]
    N = NS // S
    H = NUM_HEADS
    Dh = E // H
    L = w_ref.shape[0]

    x = x_ref[...]                                          # (N*S, E) f32
    mask_b = mask_ref[...][None, :, :]                      # (1, S, S), hoisted once

    def split_heads(t):                                     # (N*S, E) -> (H*N, S, Dh)
        return jnp.concatenate(
            [t[:, h * Dh:(h + 1) * Dh] for h in range(H)], axis=0
        ).reshape(H * N, S, Dh)

    for l in range(L):                                      # unrolled: L == 2
        w = w_ref[l]                                        # (E, 6E) bf16, pre-transposed
        w_in = w[:, 0:3 * E]                                # fused QKV proj (q cols pre-scaled)
        wo_t = w[:, 3 * E:4 * E]
        w1_t = w[:, 4 * E:5 * E]
        w2_t = w[:, 5 * E:6 * E]
        bqkv = bqkv_ref[l]                                  # (1, 3E) f32 (q part pre-scaled)
        vecs = vec_ref[l]                                   # (7, E) f32: bo,b1,b2,g1,be1,g2,be2

        # fused QKV projection (bf16 operands, f32 accumulate) + ONE packed bias add
        qkv = jnp.dot(x.astype(jnp.bfloat16), w_in,
                      preferred_element_type=jnp.float32) + bqkv    # (N*S, 3E)

        # heads -> batch axis once per tensor; attention = 2 batched matmuls + 1 softmax
        qh = split_heads(qkv[:, 0:E])                       # (H*N, S, Dh), already scaled
        kh = split_heads(qkv[:, E:2 * E])
        vh = split_heads(qkv[:, 2 * E:3 * E])

        s = jnp.einsum('bqd,bkd->bqk',
                       qh.astype(jnp.bfloat16), kh.astype(jnp.bfloat16),
                       preferred_element_type=jnp.float32) + mask_b  # (H*N, S, S)
        s = s - jnp.max(s, axis=-1, keepdims=True)
        p = jnp.exp(s)
        p = p * pl.reciprocal(jnp.sum(p, axis=-1, keepdims=True), approx=True)
        oh = jnp.einsum('bqk,bkd->bqd',
                        p.astype(jnp.bfloat16), vh.astype(jnp.bfloat16),
                        preferred_element_type=jnp.float32)          # (H*N, S, Dh)

        # heads back onto the lane axis: (H*N, S, Dh) -> (N*S, E)
        oh2 = oh.reshape(H * NS, Dh)
        attn = jnp.concatenate([oh2[h * NS:(h + 1) * NS, :] for h in range(H)], axis=-1)

        # output projection + residual + LayerNorm1
        mh = jnp.dot(attn.astype(jnp.bfloat16), wo_t,
                     preferred_element_type=jnp.float32) + vecs[0:1]
        # TODO(synk): nn.Dropout treated as identity (eval-mode semantics)
        rc1 = x + mh
        src1 = _layernorm(rc1, vecs[3:4], vecs[4:5])

        # FFN (linear1 -> relu -> linear2) + residual + LayerNorm2
        h1 = jnp.maximum(
            jnp.dot(src1.astype(jnp.bfloat16), w1_t,
                    preferred_element_type=jnp.float32) + vecs[1:2], 0.0)
        ff = jnp.dot(h1.astype(jnp.bfloat16), w2_t,
                     preferred_element_type=jnp.float32) + vecs[2:3]
        rc2 = src1 + ff
        x = _layernorm(rc2, vecs[5:6], vecs[6:7])

    # Encoder's final LayerNorm
    fln = fln_ref[...]
    o_ref[...] = _layernorm(x, fln[0:1], fln[1:2])          # (N*S, E)


@jax.jit
def encoder_forward(src, src_mask, packed):
    """src: (S, N, E) float32, src_mask: (S, S) additive float mask."""
    S, N, E = src.shape
    # Tiny XLA transpose OUTSIDE the kernel (2 KB) -> token-major (N*S, E) slab.
    x = jnp.transpose(src, (1, 0, 2)).reshape(N * S, E)
    out = pl.pallas_call(
        encoder_kernel,
        out_shape=jax.ShapeDtypeStruct((N * S, E), jnp.float32),
        in_specs=[pl.BlockSpec(memory_space=pltpu.MemorySpace.VMEM)] * 6,
        out_specs=pl.BlockSpec(memory_space=pltpu.MemorySpace.VMEM),
    )(x, src_mask, packed["w"], packed["bias_qkv"], packed["vecs"], packed["final_ln"])
    return jnp.transpose(out.reshape(N, S, E), (1, 0, 2))


def init_params(key, hidden, num_heads, num_layers):
    """Build packed, pre-transposed, lane-dense parameters for the fused kernel."""
    E = hidden
    Dh = E // num_heads
    scale = 1.0 / math.sqrt(Dh)
    w_slabs, bqkv_rows, vec_rows = [], [], []
    zeros = jnp.zeros((E,), jnp.float32)
    ones = jnp.ones((E,), jnp.float32)
    for i in range(num_layers):
        ks = jax.random.split(jax.random.fold_in(key, i), 6)
        wqkv = 0.02 * jax.random.normal(ks[0], (3 * E, E), jnp.float32)   # in_proj_weight
        wo = 0.02 * jax.random.normal(ks[1], (E, E), jnp.float32)         # out_proj.weight
        w1 = 0.02 * jax.random.normal(ks[2], (E, E), jnp.float32)         # linear1.weight
        w2 = 0.02 * jax.random.normal(ks[3], (E, E), jnp.float32)         # linear2.weight
        b1 = 0.02 * jax.random.normal(ks[4], (E,), jnp.float32)           # linear1.bias
        b2 = 0.02 * jax.random.normal(ks[5], (E,), jnp.float32)           # linear2.bias
        bqkv = jnp.zeros((3 * E,), jnp.float32)                           # in_proj_bias
        bo = zeros                                                        # out_proj.bias

        # Kernel computes x @ W^T; fold 1/sqrt(Dh) into the q columns / q bias (free),
        # then pack all four transposed weights lane-wise into one (E, 6E) slab.
        wqkv_t = wqkv.T                                                   # (E, 3E)
        wqkv_t = jnp.concatenate([wqkv_t[:, :E] * scale, wqkv_t[:, E:]], axis=1)
        bqkv = jnp.concatenate([bqkv[:E] * scale, bqkv[E:]])
        w_slabs.append(jnp.concatenate([wqkv_t, wo.T, w1.T, w2.T], axis=1))   # (E, 6E)
        bqkv_rows.append(bqkv[None, :])                                   # (1, 3E)
        # rows: bo, b1, b2, norm1.w, norm1.b, norm2.w, norm2.b
        vec_rows.append(jnp.stack([bo, b1, b2, ones, zeros, ones, zeros], axis=0))
    return dict(
        w=jnp.stack(w_slabs).astype(jnp.bfloat16),            # (L, E, 6E) bf16
        bias_qkv=jnp.stack(bqkv_rows),                        # (L, 1, 3E) f32
        vecs=jnp.stack(vec_rows),                             # (L, 7, E) f32
        final_ln=jnp.stack([ones, zeros], axis=0),            # (2, E) f32
    )


if __name__ == "__main__":
    key = jax.random.PRNGKey(0)
    k_src, k_par = jax.random.split(key)

    src = jax.random.normal(k_src, (SEQ, BATCH, HIDDEN), jnp.float32)
    # causal additive float mask, as accepted by nn.MultiheadAttention attn_mask
    causal = jnp.triu(jnp.ones((SEQ, SEQ), jnp.float32), k=1)
    src_mask = causal * (-1e9)

    params = init_params(k_par, HIDDEN, NUM_HEADS, NUM_LAYERS)

    out = encoder_forward(src, src_mask, params)
    out = jax.block_until_ready(out)
    assert out.shape == (SEQ, BATCH, HIDDEN)
    assert bool(jnp.all(jnp.isfinite(out)))
    print("KERNEL_OK")
</pallas_src>

<mosaic_0001>
module attributes {stable_mosaic.version = 11 : i64} {
  func.func @encoder_kernel(%arg0: memref<16x32xf32, #tpu.memory_space<vmem>>, %arg1: memref<8x8xf32, #tpu.memory_space<vmem>>, %arg2: memref<2x32x192xbf16, #tpu.memory_space<vmem>>, %arg3: memref<2x1x96xf32, #tpu.memory_space<vmem>>, %arg4: memref<2x7x32xf32, #tpu.memory_space<vmem>>, %arg5: memref<2x32xf32, #tpu.memory_space<vmem>>, %arg6: memref<16x32xf32, #tpu.memory_space<vmem>>) attributes {dimension_semantics = [], scalar_prefetch = 0 : i64, scratch_operands = 0 : i64, tpu.core_type = #tpu.core_type<tc>} {
    %c0 = arith.constant 0 : index
    %c0_0 = arith.constant 0 : index
    %0 = vector.load %arg0[%c0, %c0_0] : memref<16x32xf32, #tpu.memory_space<vmem>>, vector<16x32xf32>
    %c0_1 = arith.constant 0 : index
    %c0_2 = arith.constant 0 : index
    %1 = vector.load %arg1[%c0_1, %c0_2] : memref<8x8xf32, #tpu.memory_space<vmem>>, vector<8x8xf32>
    %2 = vector.shape_cast %1 : vector<8x8xf32> to vector<1x8x8xf32>
    %c0_3 = arith.constant 0 : index
    %c0_4 = arith.constant 0 : index
    %c0_5 = arith.constant 0 : index
    %3 = vector.load %arg2[%c0_3, %c0_4, %c0_5] : memref<2x32x192xbf16, #tpu.memory_space<vmem>>, vector<1x32x192xbf16>
    %4 = vector.shape_cast %3 : vector<1x32x192xbf16> to vector<32x192xbf16>
    %5 = vector.extract_strided_slice %4 {offsets = [0, 0], sizes = [32, 96], strides = [1, 1]} : vector<32x192xbf16> to vector<32x96xbf16>
    %6 = vector.extract_strided_slice %4 {offsets = [0, 96], sizes = [32, 32], strides = [1, 1]} : vector<32x192xbf16> to vector<32x32xbf16>
    %7 = vector.extract_strided_slice %4 {offsets = [0, 128], sizes = [32, 32], strides = [1, 1]} : vector<32x192xbf16> to vector<32x32xbf16>
    %8 = vector.extract_strided_slice %4 {offsets = [0, 160], sizes = [32, 32], strides = [1, 1]} : vector<32x192xbf16> to vector<32x32xbf16>
    %c0_6 = arith.constant 0 : index
    %c0_7 = arith.constant 0 : index
    %c0_8 = arith.constant 0 : index
    %9 = vector.load %arg3[%c0_6, %c0_7, %c0_8] : memref<2x1x96xf32, #tpu.memory_space<vmem>>, vector<1x1x96xf32>
    %10 = vector.shape_cast %9 : vector<1x1x96xf32> to vector<1x96xf32>
    %c0_9 = arith.constant 0 : index
    %c0_10 = arith.constant 0 : index
    %c0_11 = arith.constant 0 : index
    %11 = vector.load %arg4[%c0_9, %c0_10, %c0_11] : memref<2x7x32xf32, #tpu.memory_space<vmem>>, vector<1x7x32xf32>
    %12 = vector.shape_cast %11 : vector<1x7x32xf32> to vector<7x32xf32>
    %13 = arith.truncf %0 : vector<16x32xf32> to vector<16x32xbf16>
    %cst = arith.constant dense<0.000000e+00> : vector<16x96xf32>
    %14 = tpu.matmul %13, %5, %cst {dimension_numbers = #tpu.dot_dimension_numbers<[1], [0], [0], [1], [0, 0, 1, 1], [], []>} : vector<16x32xbf16>, vector<32x96xbf16>, vector<16x96xf32> -> vector<16x96xf32>
    %15 = vector.broadcast %10 : vector<1x96xf32> to vector<16x96xf32>
    %16 = arith.addf %14, %15 : vector<16x96xf32>
    %17 = vector.extract_strided_slice %16 {offsets = [0, 0], sizes = [16, 32], strides = [1, 1]} : vector<16x96xf32> to vector<16x32xf32>
    %18 = vector.extract_strided_slice %17 {offsets = [0, 0], sizes = [16, 8], strides = [1, 1]} : vector<16x32xf32> to vector<16x8xf32>
    %19 = vector.extract_strided_slice %17 {offsets = [0, 8], sizes = [16, 8], strides = [1, 1]} : vector<16x32xf32> to vector<16x8xf32>
    %20 = vector.extract_strided_slice %17 {offsets = [0, 16], sizes = [16, 8], strides = [1, 1]} : vector<16x32xf32> to vector<16x8xf32>
    %21 = vector.extract_strided_slice %17 {offsets = [0, 24], sizes = [16, 8], strides = [1, 1]} : vector<16x32xf32> to vector<16x8xf32>
    %22 = tpu.concatenate %18, %19, %20, %21 in 0 : vector<16x8xf32>, vector<16x8xf32>, vector<16x8xf32>, vector<16x8xf32> -> vector<64x8xf32>
    %23 = vector.shape_cast %22 : vector<64x8xf32> to vector<8x8x8xf32>
    %24 = vector.extract_strided_slice %16 {offsets = [0, 32], sizes = [16, 32], strides = [1, 1]} : vector<16x96xf32> to vector<16x32xf32>
    %25 = vector.extract_strided_slice %24 {offsets = [0, 0], sizes = [16, 8], strides = [1, 1]} : vector<16x32xf32> to vector<16x8xf32>
    %26 = vector.extract_strided_slice %24 {offsets = [0, 8], sizes = [16, 8], strides = [1, 1]} : vector<16x32xf32> to vector<16x8xf32>
    %27 = vector.extract_strided_slice %24 {offsets = [0, 16], sizes = [16, 8], strides = [1, 1]} : vector<16x32xf32> to vector<16x8xf32>
    %28 = vector.extract_strided_slice %24 {offsets = [0, 24], sizes = [16, 8], strides = [1, 1]} : vector<16x32xf32> to vector<16x8xf32>
    %29 = tpu.concatenate %25, %26, %27, %28 in 0 : vector<16x8xf32>, vector<16x8xf32>, vector<16x8xf32>, vector<16x8xf32> -> vector<64x8xf32>
    %30 = vector.shape_cast %29 : vector<64x8xf32> to vector<8x8x8xf32>
    %31 = vector.extract_strided_slice %16 {offsets = [0, 64], sizes = [16, 32], strides = [1, 1]} : vector<16x96xf32> to vector<16x32xf32>
    %32 = vector.extract_strided_slice %31 {offsets = [0, 0], sizes = [16, 8], strides = [1, 1]} : vector<16x32xf32> to vector<16x8xf32>
    %33 = vector.extract_strided_slice %31 {offsets = [0, 8], sizes = [16, 8], strides = [1, 1]} : vector<16x32xf32> to vector<16x8xf32>
    %34 = vector.extract_strided_slice %31 {offsets = [0, 16], sizes = [16, 8], strides = [1, 1]} : vector<16x32xf32> to vector<16x8xf32>
    %35 = vector.extract_strided_slice %31 {offsets = [0, 24], sizes = [16, 8], strides = [1, 1]} : vector<16x32xf32> to vector<16x8xf32>
    %36 = tpu.concatenate %32, %33, %34, %35 in 0 : vector<16x8xf32>, vector<16x8xf32>, vector<16x8xf32>, vector<16x8xf32> -> vector<64x8xf32>
    %37 = vector.shape_cast %36 : vector<64x8xf32> to vector<8x8x8xf32>
    %38 = arith.truncf %23 : vector<8x8x8xf32> to vector<8x8x8xbf16>
    %39 = arith.truncf %30 : vector<8x8x8xf32> to vector<8x8x8xbf16>
    "tpu.trace_start"() <{level = 10 : i32, message = "bqd,bkd->bqk"}> : () -> ()
    %cst_12 = arith.constant dense<0.000000e+00> : vector<8x8x8xf32>
    %40 = tpu.matmul %38, %39, %cst_12 {dimension_numbers = #tpu.dot_dimension_numbers<[2], [2], [1], [1], [0, 0, 0, 1, 1, 1], [0], [0]>} : vector<8x8x8xbf16>, vector<8x8x8xbf16>, vector<8x8x8xf32> -> vector<8x8x8xf32>
    "tpu.trace_stop"() : () -> ()
    %41 = vector.broadcast %2 : vector<1x8x8xf32> to vector<8x8x8xf32>
    %42 = arith.addf %40, %41 : vector<8x8x8xf32>
    %cst_13 = arith.constant dense<0xFF800000> : vector<8x8xf32>
    %43 = vector.multi_reduction <maximumf>, %42, %cst_13 [2] : vector<8x8x8xf32> to vector<8x8xf32>
    %44 = vector.shape_cast %43 : vector<8x8xf32> to vector<8x8x1xf32>
    %45 = vector.broadcast %44 : vector<8x8x1xf32> to vector<8x8x8xf32>
    %46 = arith.subf %42, %45 : vector<8x8x8xf32>
    %47 = math.exp %46 : vector<8x8x8xf32>
    %cst_14 = arith.constant dense<0.000000e+00> : vector<8x8xf32>
    %48 = vector.multi_reduction <add>, %47, %cst_14 [2] : vector<8x8x8xf32> to vector<8x8xf32>
    %49 = vector.shape_cast %48 : vector<8x8xf32> to vector<8x8x1xf32>
    %50 = tpu.reciprocal %49 {approx = true} : vector<8x8x1xf32> -> vector<8x8x1xf32>
    %51 = vector.broadcast %50 : vector<8x8x1xf32> to vector<8x8x8xf32>
    %52 = arith.mulf %47, %51 : vector<8x8x8xf32>
    %53 = arith.truncf %52 : vector<8x8x8xf32> to vector<8x8x8xbf16>
    %54 = arith.truncf %37 : vector<8x8x8xf32> to vector<8x8x8xbf16>
    "tpu.trace_start"() <{level = 10 : i32, message = "bqk,bkd->bqd"}> : () -> ()
    %cst_15 = arith.constant dense<0.000000e+00> : vector<8x8x8xf32>
    %55 = tpu.matmul %53, %54, %cst_15 {dimension_numbers = #tpu.dot_dimension_numbers<[2], [1], [1], [2], [0, 0, 0, 1, 1, 2], [0], [0]>} : vector<8x8x8xbf16>, vector<8x8x8xbf16>, vector<8x8x8xf32> -> vector<8x8x8xf32>
    "tpu.trace_stop"() : () -> ()
    %56 = vector.shape_cast %55 : vector<8x8x8xf32> to vector<64x8xf32>
    %57 = vector.extract_strided_slice %56 {offsets = [0, 0], sizes = [16, 8], strides = [1, 1]} : vector<64x8xf32> to vector<16x8xf32>
    %58 = vector.extract_strided_slice %56 {offsets = [16, 0], sizes = [16, 8], strides = [1, 1]} : vector<64x8xf32> to vector<16x8xf32>
    %59 = vector.extract_strided_slice %56 {offsets = [32, 0], sizes = [16, 8], strides = [1, 1]} : vector<64x8xf32> to vector<16x8xf32>
    %60 = vector.extract_strided_slice %56 {offsets = [48, 0], sizes = [16, 8], strides = [1, 1]} : vector<64x8xf32> to vector<16x8xf32>
    %61 = tpu.concatenate %57, %58, %59, %60 in 1 : vector<16x8xf32>, vector<16x8xf32>, vector<16x8xf32>, vector<16x8xf32> -> vector<16x32xf32>
    %62 = arith.truncf %61 : vector<16x32xf32> to vector<16x32xbf16>
    %cst_16 = arith.constant dense<0.000000e+00> : vector<16x32xf32>
    %63 = tpu.matmul %62, %6, %cst_16 {dimension_numbers = #tpu.dot_dimension_numbers<[1], [0], [0], [1], [0, 0, 1, 1], [], []>} : vector<16x32xbf16>, vector<32x32xbf16>, vector<16x32xf32> -> vector<16x32xf32>
    %64 = vector.extract_strided_slice %12 {offsets = [0, 0], sizes = [1, 32], strides = [1, 1]} : vector<7x32xf32> to vector<1x32xf32>
    %65 = vector.broadcast %64 : vector<1x32xf32> to vector<16x32xf32>
    %66 = arith.addf %63, %65 : vector<16x32xf32>
    %67 = arith.addf %0, %66 : vector<16x32xf32>
    %68 = vector.extract_strided_slice %12 {offsets = [3, 0], sizes = [1, 32], strides = [1, 1]} : vector<7x32xf32> to vector<1x32xf32>
    %69 = vector.extract_strided_slice %12 {offsets = [4, 0], sizes = [1, 32], strides = [1, 1]} : vector<7x32xf32> to vector<1x32xf32>
    %cst_17 = arith.constant dense<0.000000e+00> : vector<16xf32>
    %70 = vector.multi_reduction <add>, %67, %cst_17 [1] : vector<16x32xf32> to vector<16xf32>
    %71 = vector.shape_cast %70 : vector<16xf32> to vector<16x1xf32>
    %cst_18 = arith.constant 3.200000e+01 : f32
    %72 = vector.broadcast %cst_18 : f32 to vector<16x1xf32>
    %73 = arith.divf %71, %72 : vector<16x1xf32>
    %74 = vector.broadcast %73 : vector<16x1xf32> to vector<16x32xf32>
    %75 = arith.subf %67, %74 : vector<16x32xf32>
    %76 = arith.mulf %75, %75 : vector<16x32xf32>
    %cst_19 = arith.constant dense<0.000000e+00> : vector<16xf32>
    %77 = vector.multi_reduction <add>, %76, %cst_19 [1] : vector<16x32xf32> to vector<16xf32>
    %78 = vector.shape_cast %77 : vector<16xf32> to vector<16x1xf32>
    %cst_20 = arith.constant 3.200000e+01 : f32
    %79 = vector.broadcast %cst_20 : f32 to vector<16x1xf32>
    %80 = arith.divf %78, %79 : vector<16x1xf32>
    %81 = vector.broadcast %73 : vector<16x1xf32> to vector<16x32xf32>
    %82 = arith.subf %67, %81 : vector<16x32xf32>
    %cst_21 = arith.constant 9.99999974E-6 : f32
    %83 = vector.broadcast %cst_21 : f32 to vector<16x1xf32>
    %84 = arith.addf %80, %83 : vector<16x1xf32>
    %85 = math.rsqrt %84 : vector<16x1xf32>
    %86 = vector.broadcast %85 : vector<16x1xf32> to vector<16x32xf32>
    %87 = arith.mulf %82, %86 : vector<16x32xf32>
    %88 = vector.broadcast %68 : vector<1x32xf32> to vector<16x32xf32>
    %89 = arith.mulf %87, %88 : vector<16x32xf32>
    %90 = vector.broadcast %69 : vector<1x32xf32> to vector<16x32xf32>
    %91 = arith.addf %89, %90 : vector<16x32xf32>
    %92 = arith.truncf %91 : vector<16x32xf32> to vector<16x32xbf16>
    %cst_22 = arith.constant dense<0.000000e+00> : vector<16x32xf32>
    %93 = tpu.matmul %92, %7, %cst_22 {dimension_numbers = #tpu.dot_dimension_numbers<[1], [0], [0], [1], [0, 0, 1, 1], [], []>} : vector<16x32xbf16>, vector<32x32xbf16>, vector<16x32xf32> -> vector<16x32xf32>
    %94 = vector.extract_strided_slice %12 {offsets = [1, 0], sizes = [1, 32], strides = [1, 1]} : vector<7x32xf32> to vector<1x32xf32>
    %95 = vector.broadcast %94 : vector<1x32xf32> to vector<16x32xf32>
    %96 = arith.addf %93, %95 : vector<16x32xf32>
    %cst_23 = arith.constant 0.000000e+00 : f32
    %97 = vector.broadcast %cst_23 : f32 to vector<16x32xf32>
    %98 = arith.maximumf %96, %97 : vector<16x32xf32>
    %99 = arith.truncf %98 : vector<16x32xf32> to vector<16x32xbf16>
    %cst_24 = arith.constant dense<0.000000e+00> : vector<16x32xf32>
    %100 = tpu.matmul %99, %8, %cst_24 {dimension_numbers = #tpu.dot_dimension_numbers<[1], [0], [0], [1], [0, 0, 1, 1], [], []>} : vector<16x32xbf16>, vector<32x32xbf16>, vector<16x32xf32> -> vector<16x32xf32>
    %101 = vector.extract_strided_slice %12 {offsets = [2, 0], sizes = [1, 32], strides = [1, 1]} : vector<7x32xf32> to vector<1x32xf32>
    %102 = vector.broadcast %101 : vector<1x32xf32> to vector<16x32xf32>
    %103 = arith.addf %100, %102 : vector<16x32xf32>
    %104 = arith.addf %91, %103 : vector<16x32xf32>
    %105 = vector.extract_strided_slice %12 {offsets = [5, 0], sizes = [1, 32], strides = [1, 1]} : vector<7x32xf32> to vector<1x32xf32>
    %106 = vector.extract_strided_slice %12 {offsets = [6, 0], sizes = [1, 32], strides = [1, 1]} : vector<7x32xf32> to vector<1x32xf32>
    %cst_25 = arith.constant dense<0.000000e+00> : vector<16xf32>
    %107 = vector.multi_reduction <add>, %104, %cst_25 [1] : vector<16x32xf32> to vector<16xf32>
    %108 = vector.shape_cast %107 : vector<16xf32> to vector<16x1xf32>
    %cst_26 = arith.constant 3.200000e+01 : f32
    %109 = vector.broadcast %cst_26 : f32 to vector<16x1xf32>
    %110 = arith.divf %108, %109 : vector<16x1xf32>
    %111 = vector.broadcast %110 : vector<16x1xf32> to vector<16x32xf32>
    %112 = arith.subf %104, %111 : vector<16x32xf32>
    %113 = arith.mulf %112, %112 : vector<16x32xf32>
    %cst_27 = arith.constant dense<0.000000e+00> : vector<16xf32>
    %114 = vector.multi_reduction <add>, %113, %cst_27 [1] : vector<16x32xf32> to vector<16xf32>
    %115 = vector.shape_cast %114 : vector<16xf32> to vector<16x1xf32>
    %cst_28 = arith.constant 3.200000e+01 : f32
    %116 = vector.broadcast %cst_28 : f32 to vector<16x1xf32>
    %117 = arith.divf %115, %116 : vector<16x1xf32>
    %118 = vector.broadcast %110 : vector<16x1xf32> to vector<16x32xf32>
    %119 = arith.subf %104, %118 : vector<16x32xf32>
    %cst_29 = arith.constant 9.99999974E-6 : f32
    %120 = vector.broadcast %cst_29 : f32 to vector<16x1xf32>
    %121 = arith.addf %117, %120 : vector<16x1xf32>
    %122 = math.rsqrt %121 : vector<16x1xf32>
    %123 = vector.broadcast %122 : vector<16x1xf32> to vector<16x32xf32>
    %124 = arith.mulf %119, %123 : vector<16x32xf32>
    %125 = vector.broadcast %105 : vector<1x32xf32> to vector<16x32xf32>
    %126 = arith.mulf %124, %125 : vector<16x32xf32>
    %127 = vector.broadcast %106 : vector<1x32xf32> to vector<16x32xf32>
    %128 = arith.addf %126, %127 : vector<16x32xf32>
    %c1 = arith.constant 1 : index
    %c0_30 = arith.constant 0 : index
    %c0_31 = arith.constant 0 : index
    %129 = vector.load %arg2[%c1, %c0_30, %c0_31] : memref<2x32x192xbf16, #tpu.memory_space<vmem>>, vector<1x32x192xbf16>
    %130 = vector.shape_cast %129 : vector<1x32x192xbf16> to vector<32x192xbf16>
    %131 = vector.extract_strided_slice %130 {offsets = [0, 0], sizes = [32, 96], strides = [1, 1]} : vector<32x192xbf16> to vector<32x96xbf16>
    %132 = vector.extract_strided_slice %130 {offsets = [0, 96], sizes = [32, 32], strides = [1, 1]} : vector<32x192xbf16> to vector<32x32xbf16>
    %133 = vector.extract_strided_slice %130 {offsets = [0, 128], sizes = [32, 32], strides = [1, 1]} : vector<32x192xbf16> to vector<32x32xbf16>
    %134 = vector.extract_strided_slice %130 {offsets = [0, 160], sizes = [32, 32], strides = [1, 1]} : vector<32x192xbf16> to vector<32x32xbf16>
    %c1_32 = arith.constant 1 : index
    %c0_33 = arith.constant 0 : index
    %c0_34 = arith.constant 0 : index
    %135 = vector.load %arg3[%c1_32, %c0_33, %c0_34] : memref<2x1x96xf32, #tpu.memory_space<vmem>>, vector<1x1x96xf32>
    %136 = vector.shape_cast %135 : vector<1x1x96xf32> to vector<1x96xf32>
    %c1_35 = arith.constant 1 : index
    %c0_36 = arith.constant 0 : index
    %c0_37 = arith.constant 0 : index
    %137 = vector.load %arg4[%c1_35, %c0_36, %c0_37] : memref<2x7x32xf32, #tpu.memory_space<vmem>>, vector<1x7x32xf32>
    %138 = vector.shape_cast %137 : vector<1x7x32xf32> to vector<7x32xf32>
    %139 = arith.truncf %128 : vector<16x32xf32> to vector<16x32xbf16>
    %cst_38 = arith.constant dense<0.000000e+00> : vector<16x96xf32>
    %140 = tpu.matmul %139, %131, %cst_38 {dimension_numbers = #tpu.dot_dimension_numbers<[1], [0], [0], [1], [0, 0, 1, 1], [], []>} : vector<16x32xbf16>, vector<32x96xbf16>, vector<16x96xf32> -> vector<16x96xf32>
    %141 = vector.broadcast %136 : vector<1x96xf32> to vector<16x96xf32>
    %142 = arith.addf %140, %141 : vector<16x96xf32>
    %143 = vector.extract_strided_slice %142 {offsets = [0, 0], sizes = [16, 32], strides = [1, 1]} : vector<16x96xf32> to vector<16x32xf32>
    %144 = vector.extract_strided_slice %143 {offsets = [0, 0], sizes = [16, 8], strides = [1, 1]} : vector<16x32xf32> to vector<16x8xf32>
    %145 = vector.extract_strided_slice %143 {offsets = [0, 8], sizes = [16, 8], strides = [1, 1]} : vector<16x32xf32> to vector<16x8xf32>
    %146 = vector.extract_strided_slice %143 {offsets = [0, 16], sizes = [16, 8], strides = [1, 1]} : vector<16x32xf32> to vector<16x8xf32>
    %147 = vector.extract_strided_slice %143 {offsets = [0, 24], sizes = [16, 8], strides = [1, 1]} : vector<16x32xf32> to vector<16x8xf32>
    %148 = tpu.concatenate %144, %145, %146, %147 in 0 : vector<16x8xf32>, vector<16x8xf32>, vector<16x8xf32>, vector<16x8xf32> -> vector<64x8xf32>
    %149 = vector.shape_cast %148 : vector<64x8xf32> to vector<8x8x8xf32>
    %150 = vector.extract_strided_slice %142 {offsets = [0, 32], sizes = [16, 32], strides = [1, 1]} : vector<16x96xf32> to vector<16x32xf32>
    %151 = vector.extract_strided_slice %150 {offsets = [0, 0], sizes = [16, 8], strides = [1, 1]} : vector<16x32xf32> to vector<16x8xf32>
    %152 = vector.extract_strided_slice %150 {offsets = [0, 8], sizes = [16, 8], strides = [1, 1]} : vector<16x32xf32> to vector<16x8xf32>
    %153 = vector.extract_strided_slice %150 {offsets = [0, 16], sizes = [16, 8], strides = [1, 1]} : vector<16x32xf32> to vector<16x8xf32>
    %154 = vector.extract_strided_slice %150 {offsets = [0, 24], sizes = [16, 8], strides = [1, 1]} : vector<16x32xf32> to vector<16x8xf32>
    %155 = tpu.concatenate %151, %152, %153, %154 in 0 : vector<16x8xf32>, vector<16x8xf32>, vector<16x8xf32>, vector<16x8xf32> -> vector<64x8xf32>
    %156 = vector.shape_cast %155 : vector<64x8xf32> to vector<8x8x8xf32>
    %157 = vector.extract_strided_slice %142 {offsets = [0, 64], sizes = [16, 32], strides = [1, 1]} : vector<16x96xf32> to vector<16x32xf32>
    %158 = vector.extract_strided_slice %157 {offsets = [0, 0], sizes = [16, 8], strides = [1, 1]} : vector<16x32xf32> to vector<16x8xf32>
    %159 = vector.extract_strided_slice %157 {offsets = [0, 8], sizes = [16, 8], strides = [1, 1]} : vector<16x32xf32> to vector<16x8xf32>
    %160 = vector.extract_strided_slice %157 {offsets = [0, 16], sizes = [16, 8], strides = [1, 1]} : vector<16x32xf32> to vector<16x8xf32>
    %161 = vector.extract_strided_slice %157 {offsets = [0, 24], sizes = [16, 8], strides = [1, 1]} : vector<16x32xf32> to vector<16x8xf32>
    %162 = tpu.concatenate %158, %159, %160, %161 in 0 : vector<16x8xf32>, vector<16x8xf32>, vector<16x8xf32>, vector<16x8xf32> -> vector<64x8xf32>
    %163 = vector.shape_cast %162 : vector<64x8xf32> to vector<8x8x8xf32>
    %164 = arith.truncf %149 : vector<8x8x8xf32> to vector<8x8x8xbf16>
    %165 = arith.truncf %156 : vector<8x8x8xf32> to vector<8x8x8xbf16>
    "tpu.trace_start"() <{level = 10 : i32, message = "bqd,bkd->bqk"}> : () -> ()
    %cst_39 = arith.constant dense<0.000000e+00> : vector<8x8x8xf32>
    %166 = tpu.matmul %164, %165, %cst_39 {dimension_numbers = #tpu.dot_dimension_numbers<[2], [2], [1], [1], [0, 0, 0, 1, 1, 1], [0], [0]>} : vector<8x8x8xbf16>, vector<8x8x8xbf16>, vector<8x8x8xf32> -> vector<8x8x8xf32>
    "tpu.trace_stop"() : () -> ()
    %167 = vector.broadcast %2 : vector<1x8x8xf32> to vector<8x8x8xf32>
    %168 = arith.addf %166, %167 : vector<8x8x8xf32>
    %cst_40 = arith.constant dense<0xFF800000> : vector<8x8xf32>
    %169 = vector.multi_reduction <maximumf>, %168, %cst_40 [2] : vector<8x8x8xf32> to vector<8x8xf32>
    %170 = vector.shape_cast %169 : vector<8x8xf32> to vector<8x8x1xf32>
    %171 = vector.broadcast %170 : vector<8x8x1xf32> to vector<8x8x8xf32>
    %172 = arith.subf %168, %171 : vector<8x8x8xf32>
    %173 = math.exp %172 : vector<8x8x8xf32>
    %cst_41 = arith.constant dense<0.000000e+00> : vector<8x8xf32>
    %174 = vector.multi_reduction <add>, %173, %cst_41 [2] : vector<8x8x8xf32> to vector<8x8xf32>
    %175 = vector.shape_cast %174 : vector<8x8xf32> to vector<8x8x1xf32>
    %176 = tpu.reciprocal %175 {approx = true} : vector<8x8x1xf32> -> vector<8x8x1xf32>
    %177 = vector.broadcast %176 : vector<8x8x1xf32> to vector<8x8x8xf32>
    %178 = arith.mulf %173, %177 : vector<8x8x8xf32>
    %179 = arith.truncf %178 : vector<8x8x8xf32> to vector<8x8x8xbf16>
    %180 = arith.truncf %163 : vector<8x8x8xf32> to vector<8x8x8xbf16>
    "tpu.trace_start"() <{level = 10 : i32, message = "bqk,bkd->bqd"}> : () -> ()
    %cst_42 = arith.constant dense<0.000000e+00> : vector<8x8x8xf32>
    %181 = tpu.matmul %179, %180, %cst_42 {dimension_numbers = #tpu.dot_dimension_numbers<[2], [1], [1], [2], [0, 0, 0, 1, 1, 2], [0], [0]>} : vector<8x8x8xbf16>, vector<8x8x8xbf16>, vector<8x8x8xf32> -> vector<8x8x8xf32>
    "tpu.trace_stop"() : () -> ()
    %182 = vector.shape_cast %181 : vector<8x8x8xf32> to vector<64x8xf32>
    %183 = vector.extract_strided_slice %182 {offsets = [0, 0], sizes = [16, 8], strides = [1, 1]} : vector<64x8xf32> to vector<16x8xf32>
    %184 = vector.extract_strided_slice %182 {offsets = [16, 0], sizes = [16, 8], strides = [1, 1]} : vector<64x8xf32> to vector<16x8xf32>
    %185 = vector.extract_strided_slice %182 {offsets = [32, 0], sizes = [16, 8], strides = [1, 1]} : vector<64x8xf32> to vector<16x8xf32>
    %186 = vector.extract_strided_slice %182 {offsets = [48, 0], sizes = [16, 8], strides = [1, 1]} : vector<64x8xf32> to vector<16x8xf32>
    %187 = tpu.concatenate %183, %184, %185, %186 in 1 : vector<16x8xf32>, vector<16x8xf32>, vector<16x8xf32>, vector<16x8xf32> -> vector<16x32xf32>
    %188 = arith.truncf %187 : vector<16x32xf32> to vector<16x32xbf16>
    %cst_43 = arith.constant dense<0.000000e+00> : vector<16x32xf32>
    %189 = tpu.matmul %188, %132, %cst_43 {dimension_numbers = #tpu.dot_dimension_numbers<[1], [0], [0], [1], [0, 0, 1, 1], [], []>} : vector<16x32xbf16>, vector<32x32xbf16>, vector<16x32xf32> -> vector<16x32xf32>
    %190 = vector.extract_strided_slice %138 {offsets = [0, 0], sizes = [1, 32], strides = [1, 1]} : vector<7x32xf32> to vector<1x32xf32>
    %191 = vector.broadcast %190 : vector<1x32xf32> to vector<16x32xf32>
    %192 = arith.addf %189, %191 : vector<16x32xf32>
    %193 = arith.addf %128, %192 : vector<16x32xf32>
    %194 = vector.extract_strided_slice %138 {offsets = [3, 0], sizes = [1, 32], strides = [1, 1]} : vector<7x32xf32> to vector<1x32xf32>
    %195 = vector.extract_strided_slice %138 {offsets = [4, 0], sizes = [1, 32], strides = [1, 1]} : vector<7x32xf32> to vector<1x32xf32>
    %cst_44 = arith.constant dense<0.000000e+00> : vector<16xf32>
    %196 = vector.multi_reduction <add>, %193, %cst_44 [1] : vector<16x32xf32> to vector<16xf32>
    %197 = vector.shape_cast %196 : vector<16xf32> to vector<16x1xf32>
    %cst_45 = arith.constant 3.200000e+01 : f32
    %198 = vector.broadcast %cst_45 : f32 to vector<16x1xf32>
    %199 = arith.divf %197, %198 : vector<16x1xf32>
    %200 = vector.broadcast %199 : vector<16x1xf32> to vector<16x32xf32>
    %201 = arith.subf %193, %200 : vector<16x32xf32>
    %202 = arith.mulf %201, %201 : vector<16x32xf32>
    %cst_46 = arith.constant dense<0.000000e+00> : vector<16xf32>
    %203 = vector.multi_reduction <add>, %202, %cst_46 [1] : vector<16x32xf32> to vector<16xf32>
    %204 = vector.shape_cast %203 : vector<16xf32> to vector<16x1xf32>
    %cst_47 = arith.constant 3.200000e+01 : f32
    %205 = vector.broadcast %cst_47 : f32 to vector<16x1xf32>
    %206 = arith.divf %204, %205 : vector<16x1xf32>
    %207 = vector.broadcast %199 : vector<16x1xf32> to vector<16x32xf32>
    %208 = arith.subf %193, %207 : vector<16x32xf32>
    %cst_48 = arith.constant 9.99999974E-6 : f32
    %209 = vector.broadcast %cst_48 : f32 to vector<16x1xf32>
    %210 = arith.addf %206, %209 : vector<16x1xf32>
    %211 = math.rsqrt %210 : vector<16x1xf32>
    %212 = vector.broadcast %211 : vector<16x1xf32> to vector<16x32xf32>
    %213 = arith.mulf %208, %212 : vector<16x32xf32>
    %214 = vector.broadcast %194 : vector<1x32xf32> to vector<16x32xf32>
    %215 = arith.mulf %213, %214 : vector<16x32xf32>
    %216 = vector.broadcast %195 : vector<1x32xf32> to vector<16x32xf32>
    %217 = arith.addf %215, %216 : vector<16x32xf32>
    %218 = arith.truncf %217 : vector<16x32xf32> to vector<16x32xbf16>
    %cst_49 = arith.constant dense<0.000000e+00> : vector<16x32xf32>
    %219 = tpu.matmul %218, %133, %cst_49 {dimension_numbers = #tpu.dot_dimension_numbers<[1], [0], [0], [1], [0, 0, 1, 1], [], []>} : vector<16x32xbf16>, vector<32x32xbf16>, vector<16x32xf32> -> vector<16x32xf32>
    %220 = vector.extract_strided_slice %138 {offsets = [1, 0], sizes = [1, 32], strides = [1, 1]} : vector<7x32xf32> to vector<1x32xf32>
    %221 = vector.broadcast %220 : vector<1x32xf32> to vector<16x32xf32>
    %222 = arith.addf %219, %221 : vector<16x32xf32>
    %cst_50 = arith.constant 0.000000e+00 : f32
    %223 = vector.broadcast %cst_50 : f32 to vector<16x32xf32>
    %224 = arith.maximumf %222, %223 : vector<16x32xf32>
    %225 = arith.truncf %224 : vector<16x32xf32> to vector<16x32xbf16>
    %cst_51 = arith.constant dense<0.000000e+00> : vector<16x32xf32>
    %226 = tpu.matmul %225, %134, %cst_51 {dimension_numbers = #tpu.dot_dimension_numbers<[1], [0], [0], [1], [0, 0, 1, 1], [], []>} : vector<16x32xbf16>, vector<32x32xbf16>, vector<16x32xf32> -> vector<16x32xf32>
    %227 = vector.extract_strided_slice %138 {offsets = [2, 0], sizes = [1, 32], strides = [1, 1]} : vector<7x32xf32> to vector<1x32xf32>
    %228 = vector.broadcast %227 : vector<1x32xf32> to vector<16x32xf32>
    %229 = arith.addf %226, %228 : vector<16x32xf32>
    %230 = arith.addf %217, %229 : vector<16x32xf32>
    %231 = vector.extract_strided_slice %138 {offsets = [5, 0], sizes = [1, 32], strides = [1, 1]} : vector<7x32xf32> to vector<1x32xf32>
    %232 = vector.extract_strided_slice %138 {offsets = [6, 0], sizes = [1, 32], strides = [1, 1]} : vector<7x32xf32> to vector<1x32xf32>
    %cst_52 = arith.constant dense<0.000000e+00> : vector<16xf32>
    %233 = vector.multi_reduction <add>, %230, %cst_52 [1] : vector<16x32xf32> to vector<16xf32>
    %234 = vector.shape_cast %233 : vector<16xf32> to vector<16x1xf32>
    %cst_53 = arith.constant 3.200000e+01 : f32
    %235 = vector.broadcast %cst_53 : f32 to vector<16x1xf32>
    %236 = arith.divf %234, %235 : vector<16x1xf32>
    %237 = vector.broadcast %236 : vector<16x1xf32> to vector<16x32xf32>
    %238 = arith.subf %230, %237 : vector<16x32xf32>
    %239 = arith.mulf %238, %238 : vector<16x32xf32>
    %cst_54 = arith.constant dense<0.000000e+00> : vector<16xf32>
    %240 = vector.multi_reduction <add>, %239, %cst_54 [1] : vector<16x32xf32> to vector<16xf32>
    %241 = vector.shape_cast %240 : vector<16xf32> to vector<16x1xf32>
    %cst_55 = arith.constant 3.200000e+01 : f32
    %242 = vector.broadcast %cst_55 : f32 to vector<16x1xf32>
    %243 = arith.divf %241, %242 : vector<16x1xf32>
    %244 = vector.broadcast %236 : vector<16x1xf32> to vector<16x32xf32>
    %245 = arith.subf %230, %244 : vector<16x32xf32>
    %cst_56 = arith.constant 9.99999974E-6 : f32
    %246 = vector.broadcast %cst_56 : f32 to vector<16x1xf32>
    %247 = arith.addf %243, %246 : vector<16x1xf32>
    %248 = math.rsqrt %247 : vector<16x1xf32>
    %249 = vector.broadcast %248 : vector<16x1xf32> to vector<16x32xf32>
    %250 = arith.mulf %245, %249 : vector<16x32xf32>
    %251 = vector.broadcast %231 : vector<1x32xf32> to vector<16x32xf32>
    %252 = arith.mulf %250, %251 : vector<16x32xf32>
    %253 = vector.broadcast %232 : vector<1x32xf32> to vector<16x32xf32>
    %254 = arith.addf %252, %253 : vector<16x32xf32>
    %c0_57 = arith.constant 0 : index
    %c0_58 = arith.constant 0 : index
    %255 = vector.load %arg5[%c0_57, %c0_58] : memref<2x32xf32, #tpu.memory_space<vmem>>, vector<2x32xf32>
    %256 = vector.extract_strided_slice %255 {offsets = [0, 0], sizes = [1, 32], strides = [1, 1]} : vector<2x32xf32> to vector<1x32xf32>
    %257 = vector.extract_strided_slice %255 {offsets = [1, 0], sizes = [1, 32], strides = [1, 1]} : vector<2x32xf32> to vector<1x32xf32>
    %cst_59 = arith.constant dense<0.000000e+00> : vector<16xf32>
    %258 = vector.multi_reduction <add>, %254, %cst_59 [1] : vector<16x32xf32> to vector<16xf32>
    %259 = vector.shape_cast %258 : vector<16xf32> to vector<16x1xf32>
    %cst_60 = arith.constant 3.200000e+01 : f32
    %260 = vector.broadcast %cst_60 : f32 to vector<16x1xf32>
    %261 = arith.divf %259, %260 : vector<16x1xf32>
    %262 = vector.broadcast %261 : vector<16x1xf32> to vector<16x32xf32>
    %263 = arith.subf %254, %262 : vector<16x32xf32>
    %264 = arith.mulf %263, %263 : vector<16x32xf32>
    %cst_61 = arith.constant dense<0.000000e+00> : vector<16xf32>
    %265 = vector.multi_reduction <add>, %264, %cst_61 [1] : vector<16x32xf32> to vector<16xf32>
    %266 = vector.shape_cast %265 : vector<16xf32> to vector<16x1xf32>
    %cst_62 = arith.constant 3.200000e+01 : f32
    %267 = vector.broadcast %cst_62 : f32 to vector<16x1xf32>
    %268 = arith.divf %266, %267 : vector<16x1xf32>
    %269 = vector.broadcast %261 : vector<16x1xf32> to vector<16x32xf32>
    %270 = arith.subf %254, %269 : vector<16x32xf32>
    %cst_63 = arith.constant 9.99999974E-6 : f32
    %271 = vector.broadcast %cst_63 : f32 to vector<16x1xf32>
    %272 = arith.addf %268, %271 : vector<16x1xf32>
    %273 = math.rsqrt %272 : vector<16x1xf32>
    %274 = vector.broadcast %273 : vector<16x1xf32> to vector<16x32xf32>
    %275 = arith.mulf %270, %274 : vector<16x32xf32>
    %276 = vector.broadcast %256 : vector<1x32xf32> to vector<16x32xf32>
    %277 = arith.mulf %275, %276 : vector<16x32xf32>
    %278 = vector.broadcast %257 : vector<1x32xf32> to vector<16x32xf32>
    %279 = arith.addf %277, %278 : vector<16x32xf32>
    %c0_64 = arith.constant 0 : index
    %c0_65 = arith.constant 0 : index
    %280 = vector.load %arg6[%c0_64, %c0_65] : memref<16x32xf32, #tpu.memory_space<vmem>>, vector<16x32xf32>
    tpu.vector_store %arg6[%c0_64, %c0_65], %279 {strides = array<i32>} : memref<16x32xf32, #tpu.memory_space<vmem>>, vector<16x32xf32>,
    return
  }
}

</mosaic_0001>

<bundles_post_ra>
// kernel: encoder_forward.1
= control target key start
LH: loop header
LB: loop body
LE: loop exit
PB: predicated region body
PF: predicated region fallthrough
CT: control target
= control target key end

     0   :  { %11 = vsyncpa [#allocation3], 0  ;;  %s1827_s24 = smov [#allocation2]   ;;  %s1828_s26 = smov 128   ;;  %s2242_s0 = inlined_call_operand.vmem [shape: f32[16,32], index: 0, kind: input, shape index: {}]   ;;  %s2243_s1 = inlined_call_operand.vmem [shape: f32[8,8], index: 1, kind: input, shape index: {}]   ;;  %s2244_s2 = inlined_call_operand.hbm [shape: bf16[2,32,192], index: 2, kind: input, shape index: {}]   ;;  %s2245_s3 = inlined_call_operand.vmem [shape: f32[2,1,96], index: 3, kind: input, shape index: {}]   ;;  %s2246_s4 = inlined_call_operand.vmem [shape: f32[2,7,32], index: 4, kind: input, shape index: {}]   ;;  %s2247_s5 = inlined_call_operand.vmem [shape: f32[2,32], index: 5, kind: input, shape index: {}]   ;;  %s2248_s6 = inlined_call_operand.vmem [shape: f32[16,32], index: 6, kind: output, shape index: {}]  }
   0x1   :  { %s20_s23 = sshll.u32 %s2244_s2, 4  ;;  %s22_s25 = sshll.u32 %s1827_s24, 4  ;;  %s21_s23 = int_to_ptr.hbm [resolvable:$true] %s20_s23  ;;  %s23_s25 = int_to_ptr.vmem [resolvable:$true] %s22_s25 }
   0x2   :  { %s1829_s27 = smov 8  }
   0x3   :  { %28 = dma.hbm_to_vmem [thread:$0]  %s21_s23, 1024, %s23_s25, [#allocation3], %s1828_s26, %s1828_s26, %s1829_s27  }
   0x4   :  { %1825 = dma.done.wait [#allocation3], 1024  }
   0x5   :  { %1826 = vsyncadd [#allocation3], 4294966272  ;;  %v1594_v0 = vld [vmem:[#allocation2 + $0x10] sm:$0xf]  ;;  %v1665_v1 = vld [vmem:[#allocation2 + $0x14] sm:$0xf0] }
   0x6   :  { %v1590_v2 = vld [vmem:[#allocation2] sm:$0xf]  ;;  %v1878_v3 = vor.u32 %v1665_v1, %v1594_v0  ;;  %v1663_v4 = vld [vmem:[#allocation2 + $0x4] sm:$0xf0]  ;;  %vm65_vm0 = vcmask 261120   ;;  %s1830_s9 = smov 112  }
   0x7   :  { %v1881_v5 = vor.u32 %v1663_v4, %v1590_v2  ;;  %v1886_v6 = vld [vmem:[%s2242_s0] sm:$0xff]  ;;  %v1891_v7 = vld [vmem:[%s2242_s0 + $0x8] sm:$0xff]  ;;  %s1831_s10 = smov 120   ;;  %s1832_s0 = smov 104   ;;  %vm116_vm1 = vcmask 64512   ;;  %vm405_vm2 = vcmask 1043456  }
   0x8   :  { %75 = vmatpush.bf16.msra.mxu0 %v1878_v3  ;;  %v49_v8 = vpack.c.bf16 %v1891_v7, %v1886_v6  ;;  %v1712_v9 = vld [vmem:[%s2245_s3] ss:$0 sm:$0xff]  ;;  %s1833_s11 = smov 96   ;;  %s1834_s12 = smov 64   ;;  %vm595_vm3 = vcmask 130048   ;;  %vm598_vm4 = vcmask 195584  }
   0x9   :  { %v1941_v52 = vld [vmem:[%s2243_s1] sm:$0xff]  ;;  %s1835_s15 = smov 32   ;;  %s1836_s16 = smov 16  }
   0xa   :  { %s1837_s17 = smov 24  }
   0xc   :  { %76 = vmatpush.bf16.msra.mxu0 %v1881_v5 }
   0xf   :  { %1596 = vmatmul.msk.bf16.vlgmr.msra.gmra.mxu0 %vm65_vm0, %v49_v8 }
  0x8c   :  { %v78_v10 = vpop.f32.mrf.mxu0 }
  0x8d   :  { %v79_v11 = vadd.f32 %v1712_v9, %v78_v10 }
  0x8f   :  { %91 = vrot.lane.b32.xlu2 %v79_v11, %s1830_s9  ;;  %85 = vrot.lane.b32.xlu0 %v79_v11, %s1831_s10  ;;  %v103_v14 = vpack.c.bf16 %v79_v11, %v79_v11 }
  0x91   :  { %v112_v16 = vunpack.c.l.b16 %v103_v14 }
  0x93   :  { %v113_v18 = vpack.c.b16 %v112_v16, %v112_v16 }
  0x94   :  { %v80_v12 = vpop.f32.mrf.mxu0 }
  0x95   :  { %v81_v13 = vadd.f32 %v1712_v9, %v80_v12 }
  0x97   :  { %93 = vrot.lane.b32.xlu1 %v81_v13, %s1830_s9  ;;  %99 = vrot.lane.b32.xlu2 %v81_v13, %s1832_s0  ;;  %v104_v15 = vpack.c.bf16 %v81_v13, %v81_v13 }
  0x98   :  { %87 = vrot.lane.b32.xlu0 %v81_v13, %s1831_s10 }
  0x99   :  { %v137_v17 = vunpack.c.l.b16 %v104_v15 }
  0x9b   :  { %v138_v19 = vpack.c.b16 %v137_v17, %v137_v17 }
  0x9f   :  { %97 = vrot.lane.b32.xlu1 %v79_v11, %s1832_s0  ;;  %114 = vrot.lane.b32.xlu2 %v113_v18, %s1833_s11 }
  0xa0   :  { %139 = vrot.lane.b32.xlu0 %v138_v19, %s1833_s11 }
  0xe9   :  { %v92_v20 = vpop.permute.xlu2 %91 }
  0xea   :  { %v107_v36 = vpack.c.bf16 %v92_v20, %v92_v20 }
  0xec   :  { %v209_v42 = vunpack.c.l.b16 %v107_v36 }
  0xee   :  { %v1924_v47 = vpack.c.b16 %v209_v42, %v209_v42 }
  0xf1   :  { %v100_v21 = vpop.permute.xlu2 %99 }
  0xf2   :  { %v1911_v34 = vpack.c.bf16 %v100_v21, %v100_v21 }
  0xf4   :  { %v281_v39 = vunpack.c.l.b16 %v1911_v34 }
  0xf6   :  { %v1920_v45 = vpack.c.b16 %v281_v39, %v281_v39 }
  0xf9   :  { %v115_v22 = vpop.permute.xlu2 %114 }
  0xfa   :  { %v121_v23 = vsel %vm116_vm1, %v115_v22, 0 }
  0xfb   :  { %130 = vmatpush.bf16.xpose.msra.mxu1 %v121_v23 }
 0x101   :  { %v86_v24 = vpop.permute.xlu0 %85 }
 0x102   :  { %v105_v25 = vpack.c.bf16 %v86_v24, %v86_v24  ;;  %1597 = vmatmul.msk.bf16.vlgmr.msra.gmra.mxu1 %vm116_vm1, %v103_v14 }
 0x104   :  { %v161_v26 = vunpack.c.l.b16 %v105_v25 }
 0x106   :  { %v162_v27 = vpack.c.b16 %v161_v26, %v161_v26 }
 0x108   :  { %163 = vrot.lane.b32.xlu1 %v162_v27, %s1833_s11 }
 0x109   :  { %v94_v28 = vpop.permute.xlu1 %93 }
 0x10a   :  { %v108_v29 = vpack.c.bf16 %v94_v28, %v94_v28  ;;  %v88_v30 = vpop.permute.xlu0 %87 }
 0x10b   :  { %v106_v31 = vpack.c.bf16 %v88_v30, %v88_v30 }
 0x10c   :  { %v233_v32 = vunpack.c.l.b16 %v108_v29 }
 0x10d   :  { %v185_v33 = vunpack.c.l.b16 %v106_v31 }
 0x10e   :  { %v1913_v35 = vpack.c.b16 %v233_v32, %v233_v32 }
 0x10f   :  { %v186_v37 = vpack.c.b16 %v185_v33, %v185_v33 }
 0x110   :  { %235 = vrot.lane.b32.xlu1 %v1913_v35, %s1833_s11 }
 0x111   :  { %187 = vrot.lane.b32.xlu0 %v186_v37, %s1833_s11  ;;  %v98_v38 = vpop.permute.xlu1 %97 }
 0x112   :  { %v109_v40 = vpack.c.bf16 %v98_v38, %v98_v38  ;;  %v140_v41 = vpop.permute.xlu0 %139 }
 0x113   :  { %v145_v43 = vsel %vm116_vm1, %v140_v41, 0 }
 0x114   :  { %v257_v44 = vunpack.c.l.b16 %v109_v40  ;;  %154 = vmatpush.bf16.xpose.msra.mxu2 %v145_v43 }
 0x116   :  { %v1922_v46 = vpack.c.b16 %v257_v44, %v257_v44 }
 0x118   :  { %283 = vrot.lane.b32.xlu1 %v1920_v45, %s1833_s11  ;;  %259 = vrot.lane.b32.xlu2 %v1922_v46, %s1833_s11 }
 0x119   :  { %211 = vrot.lane.b32.xlu0 %v1924_v47, %s1833_s11 }
 0x11b   :  { %1598 = vmatmul.msk.bf16.vlgmr.msra.gmra.mxu2 %vm116_vm1, %v104_v15 }
 0x120   :  { %422 = vrot.lane.b32.xlu1 %v138_v19, %s1834_s12  ;;  %443 = vrot.lane.b32.xlu2 %v162_v27, %s1834_s12 }
 0x121   :  { %400 = vrot.lane.b32.xlu0 %v113_v18, %s1834_s12 }
 0x172   :  { %v260_v48 = vpop.permute.xlu2 %259 }
 0x173   :  { %v265_v51 = vsel %vm116_vm1, %v260_v48, 0 }
 0x17a   :  { %v164_v49 = vpop.permute.xlu1 %163  ;;  %v444_v54 = vpop.permute.xlu2 %443 }
 0x17b   :  { %v169_v50 = vsel %vm116_vm1, %v164_v49, 0  ;;  %v449_v58 = vsel %vm405_vm2, %v444_v54, 0 }
 0x17c   :  { %178 = vmatpush.bf16.xpose.msra.mxu3 %v169_v50 }
 0x17f   :  { %v132_v53 = vpop.f32.mrf.mxu1 }
 0x180   :  { %v133_v55 = vadd.f32 %v132_v53, %v1941_v52 }
 0x182   :  { %v236_v56 = vpop.permute.xlu1 %235  ;;  %v304_v57 = vsel %vm116_vm1, %v133_v55, -inf }
 0x183   :  { %v188_v59 = vpop.permute.xlu0 %187  ;;  %1599 = vmatmul.msk.bf16.vlgmr.msra.gmra.mxu3 %vm116_vm1, %v105_v25  ;;  %305 = vmax.xlane.f32.xlu1 %v304_v57  ;;  %v241_v60 = vsel %vm116_vm1, %v236_v56, 0 }
 0x184   :  { %274 = vmatpush.bf16.xpose.msrb.mxu3 %v265_v51  ;;  %v193_v61 = vsel %vm116_vm1, %v188_v59, 0  ;;  %250 = vmatpush.bf16.xpose.msrb.mxu2 %v241_v60 }
 0x185   :  { %202 = vmatpush.bf16.xpose.msrb.mxu0 %v193_v61 }
 0x187   :  { %v134_v62 = vpop.f32.mrf.mxu1 }
 0x18a   :  { %v284_v63 = vpop.permute.xlu1 %283 }
 0x18b   :  { %v289_v0 = vsel %vm116_vm1, %v284_v63, 0  ;;  %v212_v1 = vpop.permute.xlu0 %211  ;;  %1602 = vmatmul.msk.bf16.vlgmr.msrb.gmra.mxu2 %vm116_vm1, %v108_v29 }
 0x18c   :  { %458 = vmatpush.bf16.msra.mxu3 %v449_v58  ;;  %1600 = vmatmul.msk.bf16.vlgmr.msrb.gmra.mxu0 %vm116_vm1, %v106_v31  ;;  %v217_v2 = vsel %vm116_vm1, %v212_v1, 0 }
 0x18d   :  { %226 = vmatpush.bf16.xpose.msrb.mxu1 %v217_v2  ;;  %298 = vmatpush.bf16.xpose.msra.mxu0 %v289_v0 }
 0x192   :  { %v423_v4 = vpop.permute.xlu1 %422 }
 0x193   :  { %v428_v8 = vsel %vm405_vm2, %v423_v4, 0  ;;  %v401_v9 = vpop.permute.xlu0 %400  ;;  %1603 = vmatmul.msk.bf16.vlgmr.msrb.gmra.mxu3 %vm116_vm1, %v109_v40 }
 0x194   :  { %v407_v10 = vsel %vm405_vm2, %v401_v9, 0  ;;  %1601 = vmatmul.msk.bf16.vlgmr.msrb.gmra.mxu1 %vm116_vm1, %v107_v36  ;;  %437 = vmatpush.bf16.msra.mxu2 %v428_v8 }
 0x195   :  { %416 = vmatpush.bf16.msra.mxu1 %v407_v10 }
 0x19c   :  { %1604 = vmatmul.msk.bf16.vlgmr.msra.gmra.mxu0 %vm116_vm1, %v1911_v34  ;;  %464 = vrot.lane.b32.xlu1 %v186_v37, %s1834_s12 }
 0x19e   :  { %v156_v11 = vpop.f32.mrf.mxu2 }
 0x19f   :  { %v157_v12 = vadd.f32 %v156_v11, %v1941_v52 }
 0x1a1   :  { %v307_v13 = vsel %vm116_vm1, %v157_v12, -inf }
 0x1a2   :  { %308 = vmax.xlane.f32.xlu2 %v307_v13 }
 0x1a6   :  { %v158_v14 = vpop.f32.mrf.mxu2 }
 0x1f6   :  { %v306_v15 = vpop.xlane.xlu1 %305 }
 0x1f7   :  { %v328_v16 = vsub.f32 %v133_v55, %v306_v15 }
 0x1f9   :  { %v336_v18 = vmul.f32 1.442695, %v328_v16 }
 0x1fb   :  { %1714 = vpow2.f32 %v336_v18 }
 0x201   :  { %v1715_v28 = vpop.eup %1714 }
 0x202   :  { %v352_v33 = vsel %vm116_vm1, %v1715_v28, 0.0 }
 0x206   :  { %v180_v17 = vpop.f32.mrf.mxu3 }
 0x207   :  { %v181_v19 = vadd.f32 %v180_v17, %v1941_v52 }
 0x209   :  { %v204_v20 = vpop.f32.mrf.mxu0  ;;  %v310_v21 = vsel %vm116_vm1, %v181_v19, -inf }
 0x20a   :  { %v205_v22 = vadd.f32 %v204_v20, %v1941_v52  ;;  %311 = vmax.xlane.f32.xlu0 %v310_v21 }
 0x20c   :  { %v313_v23 = vsel %vm116_vm1, %v205_v22, -inf }
 0x20d   :  { %314 = vmax.xlane.f32.xlu2 %v313_v23 }
 0x20e   :  { %v182_v24 = vpop.f32.mrf.mxu3  ;;  %v252_v25 = vpop.f32.mrf.mxu2 }
 0x20f   :  { %v465_v26 = vpop.permute.xlu1 %464  ;;  %v253_v40 = vadd.f32 %v252_v25, %v1941_v52 }
 0x210   :  { %v470_v27 = vsel %vm405_vm2, %v465_v26, 0 }
 0x211   :  { %v206_v29 = vpop.f32.mrf.mxu0  ;;  %v228_v30 = vpop.f32.mrf.mxu1  ;;  %479 = vmatpush.bf16.msrb.mxu0 %v470_v27  ;;  %v319_v48 = vsel %vm116_vm1, %v253_v40, -inf }
 0x212   :  { %v229_v31 = vadd.f32 %v228_v30, %v1941_v52 }
 0x214   :  { %v316_v32 = vsel %vm116_vm1, %v229_v31, -inf }
 0x215   :  { %317 = vmax.xlane.f32.xlu1 %v316_v32  ;;  %353 = vadd.xlane.f32.xlu2 %v352_v33  ;;  %v309_v34 = vpop.xlane.xlu2 %308 }
 0x216   :  { %v329_v36 = vsub.f32 %v157_v12, %v309_v34  ;;  %v254_v37 = vpop.f32.mrf.mxu2  ;;  %v276_v38 = vpop.f32.mrf.mxu3 }
 0x217   :  { %v277_v39 = vadd.f32 %v276_v38, %v1941_v52 }
 0x218   :  { %v338_v41 = vmul.f32 1.442695, %v329_v36 }
 0x219   :  { %v230_v42 = vpop.f32.mrf.mxu1  ;;  %v300_v43 = vpop.f32.mrf.mxu0  ;;  %v322_v44 = vsel %vm116_vm1, %v277_v39, -inf }
 0x21a   :  { %1716 = vpow2.f32 %v338_v41  ;;  %323 = vmax.xlane.f32.xlu0 %v322_v44  ;;  %v301_v51 = vadd.f32 %v300_v43, %v1941_v52 }
 0x21c   :  { %v325_v55 = vsel %vm116_vm1, %v301_v51, -inf }
 0x21d   :  { %320 = vmax.xlane.f32.xlu2 %v319_v48 }
 0x21e   :  { %v278_v49 = vpop.f32.mrf.mxu3 }
 0x220   :  { %v1717_v50 = vpop.eup %1716 }
 0x221   :  { %v302_v53 = vpop.f32.mrf.mxu0  ;;  %v355_v54 = vsel %vm116_vm1, %v1717_v50, 0.0 }
 0x222   :  { %356 = vadd.xlane.f32.xlu0 %v355_v54 }
 0x225   :  { %326 = vmax.xlane.f32.xlu2 %v325_v55 }
 0x23d   :  { %506 = vrot.lane.b32.xlu2 %v1913_v35, %s1834_s12 }
 0x27d   :  { %v312_v59 = vpop.xlane.xlu0 %311 }
 0x27e   :  { %v330_v0 = vsub.f32 %v181_v19, %v312_v59 }
 0x280   :  { %v315_v56 = vpop.xlane.xlu2 %314  ;;  %v340_v35 = vmul.f32 1.442695, %v330_v0 }
 0x281   :  { %v331_v57 = vsub.f32 %v205_v22, %v315_v56 }
 0x283   :  { %v342_v58 = vmul.f32 1.442695, %v331_v57 }
 0x285   :  { %1718 = vpow2.f32 %v342_v58 }
 0x288   :  { %v318_v60 = vpop.xlane.xlu1 %317  ;;  %v354_v61 = vpop.xlane.xlu2 %353 }
 0x289   :  { %v332_v62 = vsub.f32 %v229_v31, %v318_v60  ;;  %1720 = vrcp.f32 %v354_v61 }
 0x28b   :  { %v1719_v63 = vpop.eup %1718  ;;  %v344_v1 = vmul.f32 1.442695, %v332_v62 }
 0x28c   :  { %v361_v2 = vsel %vm116_vm1, %v1719_v63, 0.0 }
 0x28d   :  { %1722 = vpow2.f32 %v344_v1  ;;  %362 = vadd.xlane.f32.xlu0 %v361_v2  ;;  %v324_v4 = vpop.xlane.xlu0 %323 }
 0x28e   :  { %v334_v8 = vsub.f32 %v277_v39, %v324_v4 }
 0x28f   :  { %v1721_v9 = vpop.eup %1720 }
 0x290   :  { %v384_v10 = vmul.f32 %v1721_v9, %v1715_v28  ;;  %v348_v11 = vmul.f32 1.442695, %v334_v8  ;;  %v321_v12 = vpop.xlane.xlu2 %320 }
 0x291   :  { %v333_v13 = vsub.f32 %v253_v40, %v321_v12 }
 0x292   :  { %v392_v14 = vpack.c.bf16 %v384_v10, %v384_v10  ;;  %1724 = vpow2.f32 %v348_v11 }
 0x293   :  { %v1980_v15 = vpop.eup %1722  ;;  %1726 = vpow2.f32 %v340_v35  ;;  %v346_v16 = vmul.f32 1.442695, %v333_v13 }
 0x294   :  { %1605 = vmatmul.msk.bf16.vlgmr.msra.gmra.mxu1 %vm116_vm1, %v392_v14  ;;  %v364_v17 = vsel %vm116_vm1, %v1980_v15, 0.0 }
 0x295   :  { %1728 = vpow2.f32 %v346_v16  ;;  %365 = vadd.xlane.f32.xlu1 %v364_v17  ;;  %v357_v18 = vpop.xlane.xlu0 %356 }
 0x296   :  { %1730 = vrcp.f32 %v357_v18 }
 0x298   :  { %v1725_v19 = vpop.eup %1724  ;;  %v327_v20 = vpop.xlane.xlu2 %326 }
 0x299   :  { %v1727_v21 = vpop.eup %1726  ;;  %v335_v22 = vsub.f32 %v301_v51, %v327_v20  ;;  %v370_v23 = vsel %vm116_vm1, %v1725_v19, 0.0 }
 0x29a   :  { %371 = vadd.xlane.f32.xlu2 %v370_v23  ;;  %v358_v27 = vsel %vm116_vm1, %v1727_v21, 0.0 }
 0x29b   :  { %v1729_v24 = vpop.eup %1728  ;;  %v350_v25 = vmul.f32 1.442695, %v335_v22 }
 0x29c   :  { %v1731_v26 = vpop.eup %1730  ;;  %v367_v28 = vsel %vm116_vm1, %v1729_v24, 0.0 }
 0x29d   :  { %v385_v29 = vmul.f32 %v1731_v26, %v1717_v50  ;;  %1732 = vpow2.f32 %v350_v25  ;;  %359 = vadd.xlane.f32.xlu1 %v358_v27  ;;  %368 = vadd.xlane.f32.xlu0 %v367_v28 }
 0x29f   :  { %v393_v30 = vpack.c.bf16 %v385_v29, %v385_v29 }
 0x2a0   :  { %v507_v31 = vpop.permute.xlu2 %506 }
 0x2a1   :  { %v512_v32 = vsel %vm405_vm2, %v507_v31, 0  ;;  %1606 = vmatmul.msk.bf16.vlgmr.msra.gmra.mxu2 %vm116_vm1, %v393_v30 }
 0x2a2   :  { %521 = vmatpush.bf16.msrb.mxu2 %v512_v32 }
 0x2a3   :  { %v1733_v33 = vpop.eup %1732 }
 0x2a4   :  { %v373_v34 = vsel %vm116_vm1, %v1733_v33, 0.0 }
 0x2a5   :  { %374 = vadd.xlane.f32.xlu0 %v373_v34 }
 0x2b2   :  { %548 = vrot.lane.b32.xlu2 %v1920_v45, %s1834_s12 }
 0x2b6   :  { %527 = vrot.lane.b32.xlu1 %v1922_v46, %s1834_s12 }
 0x2b9   :  { %485 = vrot.lane.b32.xlu0 %v1924_v47, %s1834_s12 }
 0x2c1   :  { %605 = vrot.lane.b32.xlu0 %v1878_v3, %s1835_s15 }
 0x300   :  { %v363_v36 = vpop.xlane.xlu0 %362 }
 0x301   :  { %1734 = vrcp.f32 %v363_v36 }
 0x307   :  { %v1735_v37 = vpop.eup %1734 }
 0x308   :  { %v387_v38 = vmul.f32 %v1735_v37, %v1719_v63  ;;  %v366_v39 = vpop.xlane.xlu1 %365 }
 0x30a   :  { %v395_v40 = vpack.c.bf16 %v387_v38, %v387_v38 }
 0x30c   :  { %1608 = vmatmul.msk.bf16.vlgmr.msrb.gmra.mxu0 %vm116_vm1, %v395_v40 }
 0x30d   :  { %v372_v41 = vpop.xlane.xlu2 %371 }
 0x310   :  { %v360_v42 = vpop.xlane.xlu1 %359  ;;  %v369_v43 = vpop.xlane.xlu0 %368 }
 0x311   :  { %1736 = vrcp.f32 %v360_v42  ;;  %v1998_v44 = vpop.f32.mrf.mxu1  ;;  %v2027_v42 = vld [vmem:[%s2246_s4] sm:$0x7f] }
 0x312   :  { %1738 = vrcp.f32 %v369_v43  ;;  %v602_v43 = vperm.slane %v2027_v42, 0 }
 0x315   :  { %v549_v45 = vpop.permute.xlu2 %548 }
 0x316   :  { %v554_v46 = vsel %vm405_vm2, %v549_v45, 0 }
 0x317   :  { %v1737_v48 = vpop.eup %1736  ;;  %563 = vmatpush.bf16.msra.mxu0 %v554_v46 }
 0x318   :  { %v1739_v47 = vpop.eup %1738  ;;  %v386_v49 = vmul.f32 %v1737_v48, %v1727_v21  ;;  %v375_v50 = vpop.xlane.xlu0 %374 }
 0x319   :  { %v389_v51 = vmul.f32 %v1739_v47, %v1729_v24  ;;  %1740 = vrcp.f32 %v375_v50  ;;  %v420_v53 = vpop.f32.mrf.mxu1 }
 0x31a   :  { %v394_v54 = vpack.c.bf16 %v386_v49, %v386_v49  ;;  %1742 = vrcp.f32 %v372_v41  ;;  %v1838_v53 = vmov 32.0  }
 0x31b   :  { %v397_v55 = vpack.c.bf16 %v389_v51, %v389_v51  ;;  %1744 = vrcp.f32 %v366_v39 }
 0x31c   :  { %1607 = vmatmul.msk.bf16.vlgmr.msra.gmra.mxu3 %vm116_vm1, %v394_v54  ;;  %1746 = vrcp.f32 %v1838_v53  ;;  %v715_v53 = vperm.slane %v2027_v42, 2 }
 0x31d   :  { %1610 = vmatmul.msk.bf16.vlgmr.msrb.gmra.mxu2 %vm116_vm1, %v397_v55 }
 0x31f   :  { %v1741_v56 = vpop.eup %1740 }
 0x320   :  { %v391_v57 = vmul.f32 %v1741_v56, %v1733_v33  ;;  %v1743_v59 = vpop.eup %1742 }
 0x321   :  { %v1745_v61 = vpop.eup %1744  ;;  %v390_v62 = vmul.f32 %v1743_v59, %v1725_v19 }
 0x322   :  { %v399_v58 = vpack.c.bf16 %v391_v57, %v391_v57  ;;  %v388_v1 = vmul.f32 %v1745_v61, %v1980_v15  ;;  %v1747_v54 = vpop.eup %1746 }
 0x323   :  { %v398_v2 = vpack.c.bf16 %v390_v62, %v390_v62  ;;  %v635_v55 = vmul.f32 32.0, %v1747_v54  ;;  %vm639_vm5 = vweird.f32 %v1747_v54 }
 0x324   :  { %1612 = vmatmul.msk.bf16.vlgmr.msra.gmra.mxu0 %vm116_vm1, %v399_v58  ;;  %v439_v60 = vpop.f32.mrf.mxu2  ;;  %v396_v35 = vpack.c.bf16 %v388_v1, %v388_v1 }
 0x325   :  { %v636_v56 = vsub.f32 1.0, %v635_v55 }
 0x327   :  { %v637_v57 = vmul.f32 %v1747_v54, %v636_v56 }
 0x328   :  { %v528_v63 = vpop.permute.xlu1 %527 }
 0x329   :  { %v533_v0 = vsel %vm405_vm2, %v528_v63, 0  ;;  %v638_v58 = vadd.f32 %v1747_v54, %v637_v57 }
 0x32a   :  { %542 = vmatpush.bf16.msrb.mxu3 %v533_v0 }
 0x32b   :  { %v486_v4 = vpop.permute.xlu0 %485  ;;  %v2034_v59 = vsel %vm639_vm5, %v1747_v54, %v638_v58 }
 0x32c   :  { %v491_v8 = vsel %vm405_vm2, %v486_v4, 0  ;;  %v441_v9 = vpop.f32.mrf.mxu2 }
 0x32d   :  { %500 = vmatpush.bf16.msrb.mxu1 %v491_v8  ;;  %1611 = vmatmul.msk.bf16.vlgmr.msrb.gmra.mxu3 %vm116_vm1, %v398_v2  ;;  %v1664_v8 = vld [vmem:[#allocation2 + $0x14] sm:$0xf]  ;;  %v1618_v9 = vld [vmem:[#allocation2 + $0x18] sm:$0xf0] }
 0x330   :  { %1609 = vmatmul.msk.bf16.vlgmr.msrb.gmra.mxu1 %vm116_vm1, %v396_v35  ;;  %v1621_v35 = vor.u32 %v1664_v8, %v1618_v9 }
 0x332   :  { %704 = vmatpush.bf16.msra.mxu2 %v1621_v35 }
 0x333   :  { %v606_v24 = vpop.permute.xlu0 %605 }
 0x334   :  { %618 = vmatpush.bf16.msra.mxu1 %v606_v24 }
 0x389   :  { %v481_v10 = vpop.f32.mrf.mxu0 }
 0x391   :  { %v483_v11 = vpop.f32.mrf.mxu0 }
 0x39f   :  { %v460_v12 = vpop.f32.mrf.mxu3 }
 0x3a0   :  { %v1682_v13 = vpack.i.bf16 %v481_v10, %v460_v12  ;;  %v523_v14 = vpop.f32.mrf.mxu2  ;;  %v1662_v12 = vld [vmem:[#allocation2 + $0x4] sm:$0xf] }
 0x3a1   :  { %v565_v15 = vpop.f32.mrf.mxu0 }
 0x3a2   :  { %1683 = vrot.lane.b32.xlu1 %v1682_v13, %s1829_s27  ;;  %v1614_v13 = vld [vmem:[#allocation2 + $0x8] sm:$0xf0] }
 0x3a7   :  { %v462_v3 = vpop.f32.mrf.mxu3 }
 0x3a8   :  { %v525_v16 = vpop.f32.mrf.mxu2 }
 0x3a9   :  { %v567_v17 = vpop.f32.mrf.mxu0 }
 0x3aa   :  { %603 = vrot.lane.b32.xlu1 %v1881_v5, %s1835_s15 }
 0x3ad   :  { %v502_v18 = vpop.f32.mrf.mxu1 }
 0x3ae   :  { %v1687_v19 = vpack.i.bf16 %v523_v14, %v502_v18 }
 0x3b0   :  { %1688 = vrot.lane.b32.xlu2 %v1687_v19, %s1836_s16  ;;  %v544_v20 = vpop.f32.mrf.mxu3 }
 0x3b1   :  { %v1692_v21 = vpack.i.bf16 %v565_v15, %v544_v20  ;;  %v1617_v15 = vor.u32 %v1662_v12, %v1614_v13 }
 0x3b3   :  { %1693 = vrot.lane.b32.xlu0 %v1692_v21, %s1837_s17  ;;  %705 = vmatpush.bf16.msra.mxu2 %v1617_v15 }
 0x3b5   :  { %v504_v22 = vpop.f32.mrf.mxu1 }
 0x3b8   :  { %v546_v23 = vpop.f32.mrf.mxu3 }
 0x40a   :  { %v1689_v5 = vpop.permute.xlu2 %1688 }
 0x40b   :  { %v1691_v31 = vunpack.i.h.bf16 %v1689_v5  ;;  %v1690_v32 = vunpack.i.l.bf16 %v1689_v5 }
 0x414   :  { %v1684_v25 = vpop.permute.xlu1 %1683 }
 0x415   :  { %v1686_v27 = vunpack.i.h.bf16 %v1684_v25  ;;  %v1685_v28 = vunpack.i.l.bf16 %v1684_v25 }
 0x417   :  { %v594_v29 = vsel %vm116_vm1, %v439_v60, %v1686_v27  ;;  %v593_v30 = vsel %vm116_vm1, %v1998_v44, %v1685_v28 }
 0x418   :  { %v596_v37 = vsel %vm595_vm3, %v593_v30, %v1690_v32  ;;  %v597_v38 = vsel %vm595_vm3, %v594_v29, %v1691_v31  ;;  %v679_v29 = vperm.slane %v2027_v42, 3 }
 0x41c   :  { %v604_v26 = vpop.permute.xlu1 %603 }
 0x41d   :  { %619 = vmatpush.bf16.msra.mxu1 %v604_v26 }
 0x425   :  { %v1694_v33 = vpop.permute.xlu0 %1693 }
 0x426   :  { %v1696_v34 = vunpack.i.h.bf16 %v1694_v33  ;;  %v1695_v36 = vunpack.i.l.bf16 %v1694_v33  ;;  %v682_v33 = vperm.slane %v2027_v42, 4 }
 0x428   :  { %v599_v39 = vsel %vm598_vm4, %v596_v37, %v1695_v36  ;;  %v600_v40 = vsel %vm598_vm4, %v597_v38, %v1696_v34 }
 0x429   :  { %v601_v41 = vpack.c.bf16 %v600_v40, %v599_v39 }
 0x42b   :  { %1613 = vmatmul.msk.bf16.vlgmr.msra.gmra.mxu1 %vm65_vm0, %v601_v41 }
 0x4a8   :  { %v621_v44 = vpop.f32.mrf.mxu1 }
 0x4a9   :  { %v622_v45 = vadd.f32 %v621_v44, %v602_v43 }
 0x4ab   :  { %v626_v46 = vadd.f32 %v622_v45, %v1886_v6  ;;  %v686_v45 = vperm.slane %v2027_v42, 1 }
 0x4ad   :  { %v628_v48 = vsel %vm65_vm0, %v626_v46, 0.0 }
 0x4ae   :  { %629 = vadd.xlane.f32.xlu2 %v628_v48 }
 0x4b0   :  { %v623_v47 = vpop.f32.mrf.mxu1 }
 0x4b1   :  { %v624_v49 = vadd.f32 %v623_v47, %v602_v43 }
 0x4b3   :  { %v627_v50 = vadd.f32 %v624_v49, %v1891_v7 }
 0x4b5   :  { %v631_v51 = vsel %vm65_vm0, %v627_v50, 0.0 }
 0x4b6   :  { %632 = vadd.xlane.f32.xlu0 %v631_v51 }
 0x4ca   :  { %718 = vrot.lane.b32.xlu0 %v1621_v35, %s1833_s11 }
 0x521   :  { %v630_v6 = vpop.xlane.xlu2 %629 }
 0x522   :  { %v641_v60 = vmul.f32 %v2034_v59, %v630_v6 }
 0x524   :  { %v643_v61 = vsub.f32 %v626_v46, %v641_v60 }
 0x526   :  { %v645_v62 = vmul.f32 %v643_v61, %v643_v61 }
 0x528   :  { %v647_v7 = vsel %vm65_vm0, %v645_v62, 0.0 }
 0x529   :  { %v633_v63 = vpop.xlane.xlu0 %632  ;;  %648 = vadd.xlane.f32.xlu1 %v647_v7 }
 0x52a   :  { %v642_v0 = vmul.f32 %v2034_v59, %v633_v63 }
 0x52c   :  { %v644_v1 = vsub.f32 %v627_v50, %v642_v0 }
 0x52e   :  { %v646_v2 = vmul.f32 %v644_v1, %v644_v1 }
 0x530   :  { %v650_v4 = vsel %vm65_vm0, %v646_v2, 0.0 }
 0x531   :  { %651 = vadd.xlane.f32.xlu2 %v650_v4 }
 0x53c   :  { %v719_v41 = vpop.permute.xlu0 %718 }
 0x53d   :  { %731 = vmatpush.bf16.msra.mxu3 %v719_v41 }
 0x542   :  { %716 = vrot.lane.b32.xlu1 %v1617_v15, %s1833_s11  ;;  %v1628_v15 = vld [vmem:[#allocation2 + $0x20] sm:$0xf] }
 0x59c   :  { %v649_v10 = vpop.xlane.xlu1 %648 }
 0x59d   :  { %v653_v11 = vmul.f32 %v649_v10, %v2034_v59  ;;  %v1632_v10 = vld [vmem:[#allocation2 + $0x30] sm:$0xf] }
 0x59f   :  { %v655_v14 = vadd.f32 1e-05, %v653_v11  ;;  %v1669_v11 = vld [vmem:[#allocation2 + $0x34] sm:$0xf0] }
 0x5a0   :  { %v2056_v12 = vor.u32 %v1669_v11, %v1632_v10 }
 0x5a1   :  { %1748 = vrsqrt.f32 %v655_v14  ;;  %vm663_vm7 = vweird.f32 %v655_v14 }
 0x5a2   :  { %825 = vmatpush.bf16.msrb.mxu0 %v2056_v12 }
 0x5a4   :  { %v652_v3 = vpop.xlane.xlu2 %651 }
 0x5a5   :  { %v654_v16 = vmul.f32 %v652_v3, %v2034_v59  ;;  %v1667_v3 = vld [vmem:[#allocation2 + $0x24] sm:$0xf0] }
 0x5a7   :  { %v1749_v17 = vpop.eup %1748  ;;  %v656_v18 = vadd.f32 1e-05, %v654_v16 }
 0x5a8   :  { %v658_v19 = vmul.f32 %v1749_v17, %v655_v14  ;;  %vm664_vm6 = vweird.f32 %v1749_v17 }
 0x5a9   :  { %1750 = vrsqrt.f32 %v656_v18  ;;  %vm665_vm8 = vmor %vm663_vm7, %vm664_vm6  ;;  %vm673_vm10 = vweird.f32 %v656_v18 }
 0x5aa   :  { %v659_v20 = vmul.f32 %v1749_v17, %v658_v19 }
 0x5ac   :  { %v660_v21 = vmul.f32 0.5, %v659_v20 }
 0x5ae   :  { %v661_v22 = vsub.f32 1.5, %v660_v21 }
 0x5af   :  { %v1751_v23 = vpop.eup %1750 }
 0x5b0   :  { %v662_v24 = vmul.f32 %v1749_v17, %v661_v22  ;;  %v668_v25 = vmul.f32 %v1751_v23, %v656_v18  ;;  %vm674_vm9 = vweird.f32 %v1751_v23 }
 0x5b1   :  { %vm675_vm11 = vmor %vm673_vm10, %vm674_vm9 }
 0x5b2   :  { %v669_v26 = vmul.f32 %v1751_v23, %v668_v25  ;;  %v666_v27 = vsel %vm665_vm8, %v1749_v17, %v662_v24  ;;  %v2060_v17 = vor.u32 %v1667_v3, %v1628_v15 }
 0x5b3   :  { %v677_v30 = vmul.f32 %v666_v27, %v643_v61 }
 0x5b4   :  { %v670_v28 = vmul.f32 0.5, %v669_v26  ;;  %v717_v43 = vpop.permute.xlu1 %716  ;;  %826 = vmatpush.bf16.msrb.mxu0 %v2060_v17 }
 0x5b5   :  { %v680_v34 = vmul.f32 %v679_v29, %v677_v30  ;;  %732 = vmatpush.bf16.msra.mxu3 %v717_v43 }
 0x5b6   :  { %v671_v5 = vsub.f32 1.5, %v670_v28 }
 0x5b7   :  { %v683_v38 = vadd.f32 %v682_v33, %v680_v34 }
 0x5b8   :  { %v672_v31 = vmul.f32 %v1751_v23, %v671_v5 }
 0x5ba   :  { %v676_v32 = vsel %vm675_vm11, %v1751_v23, %v672_v31 }
 0x5bb   :  { %v678_v36 = vmul.f32 %v676_v32, %v644_v1  ;;  %v785_v32 = vperm.slane %v2027_v42, 5 }
 0x5bd   :  { %v681_v37 = vmul.f32 %v679_v29, %v678_v36 }
 0x5bf   :  { %v684_v39 = vadd.f32 %v682_v33, %v681_v37  ;;  %v788_v37 = vperm.slane %v2027_v42, 6 }
 0x5c1   :  { %v685_v40 = vpack.c.bf16 %v684_v39, %v683_v38 }
 0x5c3   :  { %1622 = vmatmul.msk.bf16.vlgmr.msra.gmra.mxu2 %vm65_vm0, %v685_v40 }
 0x646   :  { %v707_v44 = vpop.f32.mrf.mxu2 }
 0x647   :  { %v708_v46 = vadd.f32 %v707_v44, %v686_v45 }
 0x649   :  { %v712_v49 = vmax.f32 %v708_v46, 0.0 }
 0x64e   :  { %v709_v48 = vpop.f32.mrf.mxu2 }
 0x64f   :  { %v710_v47 = vadd.f32 %v709_v48, %v686_v45  ;;  %v1713_v45 = vld [vmem:[%s2245_s3 + $0x1] ss:$0 sm:$0xff] }
 0x651   :  { %v713_v50 = vmax.f32 %v710_v47, 0.0 }
 0x653   :  { %v714_v51 = vpack.c.bf16 %v713_v50, %v712_v49 }
 0x655   :  { %1623 = vmatmul.msk.bf16.vlgmr.msra.gmra.mxu3 %vm65_vm0, %v714_v51 }
 0x6d8   :  { %v734_v54 = vpop.f32.mrf.mxu3 }
 0x6d9   :  { %v735_v55 = vadd.f32 %v734_v54, %v715_v53 }
 0x6db   :  { %v739_v56 = vadd.f32 %v735_v55, %v683_v38 }
 0x6dd   :  { %v741_v57 = vsel %vm65_vm0, %v739_v56, 0.0 }
 0x6de   :  { %742 = vadd.xlane.f32.xlu2 %v741_v57 }
 0x6e0   :  { %v736_v58 = vpop.f32.mrf.mxu3 }
 0x6e1   :  { %v737_v6 = vadd.f32 %v736_v58, %v715_v53 }
 0x6e3   :  { %v740_v60 = vadd.f32 %v737_v6, %v684_v39 }
 0x6e5   :  { %v744_v61 = vsel %vm65_vm0, %v740_v60, 0.0 }
 0x6e6   :  { %745 = vadd.xlane.f32.xlu2 %v744_v61 }
 0x751   :  { %v743_v62 = vpop.xlane.xlu2 %742 }
 0x752   :  { %v747_v7 = vmul.f32 %v743_v62, %v2034_v59 }
 0x754   :  { %v749_v63 = vsub.f32 %v739_v56, %v747_v7 }
 0x756   :  { %v751_v0 = vmul.f32 %v749_v63, %v749_v63 }
 0x758   :  { %v753_v1 = vsel %vm65_vm0, %v751_v0, 0.0 }
 0x759   :  { %754 = vadd.xlane.f32.xlu0 %v753_v1  ;;  %v746_v2 = vpop.xlane.xlu2 %745 }
 0x75a   :  { %v748_v4 = vmul.f32 %v746_v2, %v2034_v59 }
 0x75c   :  { %v750_v8 = vsub.f32 %v740_v60, %v748_v4 }
 0x75e   :  { %v752_v9 = vmul.f32 %v750_v8, %v750_v8 }
 0x760   :  { %v756_v35 = vsel %vm65_vm0, %v752_v9, 0.0 }
 0x761   :  { %757 = vadd.xlane.f32.xlu2 %v756_v35 }
 0x7cc   :  { %v755_v13 = vpop.xlane.xlu0 %754 }
 0x7cd   :  { %v759_v14 = vmul.f32 %v755_v13, %v2034_v59 }
 0x7cf   :  { %v761_v16 = vadd.f32 1e-05, %v759_v14 }
 0x7d1   :  { %1752 = vrsqrt.f32 %v761_v16  ;;  %vm769_vm13 = vweird.f32 %v761_v16 }
 0x7d4   :  { %v758_v18 = vpop.xlane.xlu2 %757 }
 0x7d5   :  { %v760_v19 = vmul.f32 %v758_v18, %v2034_v59 }
 0x7d7   :  { %v1753_v20 = vpop.eup %1752  ;;  %v762_v21 = vadd.f32 1e-05, %v760_v19 }
 0x7d8   :  { %v764_v22 = vmul.f32 %v1753_v20, %v761_v16  ;;  %vm770_vm12 = vweird.f32 %v1753_v20 }
 0x7d9   :  { %1754 = vrsqrt.f32 %v762_v21  ;;  %vm771_vm14 = vmor %vm769_vm13, %vm770_vm12  ;;  %vm779_vm5 = vweird.f32 %v762_v21 }
 0x7da   :  { %v765_v23 = vmul.f32 %v1753_v20, %v764_v22 }
 0x7dc   :  { %v766_v24 = vmul.f32 0.5, %v765_v23 }
 0x7de   :  { %v767_v25 = vsub.f32 1.5, %v766_v24 }
 0x7df   :  { %v1755_v26 = vpop.eup %1754 }
 0x7e0   :  { %v768_v27 = vmul.f32 %v1753_v20, %v767_v25  ;;  %v774_v28 = vmul.f32 %v1755_v26, %v762_v21  ;;  %vm780_vm15 = vweird.f32 %v1755_v26 }
 0x7e1   :  { %vm781_vm6 = vmor %vm779_vm5, %vm780_vm15 }
 0x7e2   :  { %v775_v5 = vmul.f32 %v1755_v26, %v774_v28  ;;  %v772_v29 = vsel %vm771_vm14, %v1753_v20, %v768_v27 }
 0x7e3   :  { %v783_v33 = vmul.f32 %v772_v29, %v749_v63 }
 0x7e4   :  { %v776_v30 = vmul.f32 0.5, %v775_v5 }
 0x7e5   :  { %v786_v38 = vmul.f32 %v785_v32, %v783_v33 }
 0x7e6   :  { %v777_v31 = vsub.f32 1.5, %v776_v30 }
 0x7e7   :  { %v2066_v41 = vadd.f32 %v788_v37, %v786_v38 }
 0x7e8   :  { %v778_v34 = vmul.f32 %v1755_v26, %v777_v31 }
 0x7ea   :  { %v782_v36 = vsel %vm781_vm6, %v1755_v26, %v778_v34 }
 0x7eb   :  { %v784_v39 = vmul.f32 %v782_v36, %v750_v8 }
 0x7ed   :  { %v787_v40 = vmul.f32 %v785_v32, %v784_v39 }
 0x7ef   :  { %v2068_v43 = vadd.f32 %v788_v37, %v787_v40 }
 0x7f1   :  { %v800_v44 = vpack.c.bf16 %v2068_v43, %v2066_v41 }
 0x7f3   :  { %1634 = vmatmul.msk.bf16.vlgmr.msrb.gmra.mxu0 %vm65_vm0, %v800_v44 }
 0x870   :  { %v828_v46 = vpop.f32.mrf.mxu0 }
 0x871   :  { %v829_v48 = vadd.f32 %v1713_v45, %v828_v46 }
 0x873   :  { %835 = vrot.lane.b32.xlu1 %v829_v48, %s1831_s10  ;;  %v853_v42 = vpack.c.bf16 %v829_v48, %v829_v48 }
 0x875   :  { %v862_v47 = vunpack.c.l.b16 %v853_v42 }
 0x877   :  { %v863_v49 = vpack.c.b16 %v862_v47, %v862_v47 }
 0x878   :  { %v830_v50 = vpop.f32.mrf.mxu0 }
 0x879   :  { %v831_v51 = vadd.f32 %v1713_v45, %v830_v50  ;;  %864 = vrot.lane.b32.xlu0 %v863_v49, %s1833_s11 }
 0x87b   :  { %837 = vrot.lane.b32.xlu2 %v831_v51, %s1831_s10  ;;  %843 = vrot.lane.b32.xlu1 %v831_v51, %s1830_s9  ;;  %v854_v53 = vpack.c.bf16 %v831_v51, %v831_v51 }
 0x87d   :  { %v886_v54 = vunpack.c.l.b16 %v854_v53 }
 0x87f   :  { %v887_v55 = vpack.c.b16 %v886_v54, %v886_v54 }
 0x883   :  { %849 = vrot.lane.b32.xlu2 %v831_v51, %s1832_s0  ;;  %847 = vrot.lane.b32.xlu1 %v829_v48, %s1832_s0 }
 0x88b   :  { %841 = vrot.lane.b32.xlu1 %v829_v48, %s1830_s9 }
 0x893   :  { %888 = vrot.lane.b32.xlu1 %v887_v55, %s1833_s11 }
 0x8d5   :  { %v838_v56 = vpop.permute.xlu2 %837 }
 0x8d6   :  { %v856_v57 = vpack.c.bf16 %v838_v56, %v838_v56 }
 0x8d8   :  { %v934_v58 = vunpack.c.l.b16 %v856_v57 }
 0x8da   :  { %v2084_v6 = vpack.c.b16 %v934_v58, %v934_v58 }
 0x8dc   :  { %936 = vrot.lane.b32.xlu1 %v2084_v6, %s1833_s11 }
 0x8dd   :  { %v850_v60 = vpop.permute.xlu2 %849 }
 0x8de   :  { %v860_v61 = vpack.c.bf16 %v850_v60, %v850_v60 }
 0x8e0   :  { %v1030_v62 = vunpack.c.l.b16 %v860_v61 }
 0x8e2   :  { %v2088_v7 = vpack.c.b16 %v1030_v62, %v1030_v62 }
 0x8e4   :  { %1032 = vrot.lane.b32.xlu0 %v2088_v7, %s1833_s11 }
 0x8e5   :  { %v836_v63 = vpop.permute.xlu1 %835 }
 0x8e6   :  { %v855_v0 = vpack.c.bf16 %v836_v63, %v836_v63  ;;  %v1800_v63 = vld [vmem:[%s2243_s1] sm:$0xff] }
 0x8e8   :  { %v910_v1 = vunpack.c.l.b16 %v855_v0 }
 0x8ea   :  { %v911_v2 = vpack.c.b16 %v910_v1, %v910_v1 }
 0x8eb   :  { %v865_v4 = vpop.permute.xlu0 %864 }
 0x8ec   :  { %v870_v8 = vsel %vm116_vm1, %v865_v4, 0  ;;  %912 = vrot.lane.b32.xlu2 %v911_v2, %s1833_s11  ;;  %1149 = vrot.lane.b32.xlu0 %v863_v49, %s1834_s12 }
 0x8ed   :  { %v844_v9 = vpop.permute.xlu1 %843  ;;  %879 = vmatpush.bf16.xpose.msrb.mxu1 %v870_v8 }
 0x8ee   :  { %v858_v35 = vpack.c.bf16 %v844_v9, %v844_v9 }
 0x8f0   :  { %v982_v10 = vunpack.c.l.b16 %v858_v35 }
 0x8f2   :  { %v983_v11 = vpack.c.b16 %v982_v10, %v982_v10 }
 0x8f4   :  { %984 = vrot.lane.b32.xlu2 %v983_v11, %s1833_s11  ;;  %1635 = vmatmul.msk.bf16.vlgmr.msrb.gmra.mxu1 %vm116_vm1, %v853_v42 }
 0x8f5   :  { %v848_v13 = vpop.permute.xlu1 %847 }
 0x8f6   :  { %v859_v14 = vpack.c.bf16 %v848_v13, %v848_v13 }
 0x8f8   :  { %v1006_v15 = vunpack.c.l.b16 %v859_v14 }
 0x8fa   :  { %v2097_v3 = vpack.c.b16 %v1006_v15, %v1006_v15 }
 0x8fc   :  { %1008 = vrot.lane.b32.xlu1 %v2097_v3, %s1833_s11 }
 0x8fd   :  { %v842_v16 = vpop.permute.xlu1 %841 }
 0x8fe   :  { %v857_v18 = vpack.c.bf16 %v842_v16, %v842_v16 }
 0x900   :  { %v958_v19 = vunpack.c.l.b16 %v857_v18 }
 0x902   :  { %v2101_v20 = vpack.c.b16 %v958_v19, %v958_v19 }
 0x904   :  { %1170 = vrot.lane.b32.xlu1 %v887_v55, %s1834_s12  ;;  %960 = vrot.lane.b32.xlu2 %v2101_v20, %s1833_s11 }
 0x905   :  { %v889_v21 = vpop.permute.xlu1 %888 }
 0x906   :  { %v894_v22 = vsel %vm116_vm1, %v889_v21, 0 }
 0x907   :  { %903 = vmatpush.bf16.xpose.msrb.mxu2 %v894_v22 }
 0x90c   :  { %1191 = vrot.lane.b32.xlu2 %v911_v2, %s1834_s12 }
 0x90e   :  { %1636 = vmatmul.msk.bf16.vlgmr.msrb.gmra.mxu2 %vm116_vm1, %v854_v53 }
 0x946   :  { %v913_v23 = vpop.permute.xlu2 %912 }
 0x947   :  { %v918_v24 = vsel %vm116_vm1, %v913_v23, 0 }
 0x948   :  { %927 = vmatpush.bf16.xpose.msrb.mxu3 %v918_v24 }
 0x94e   :  { %v985_v25 = vpop.permute.xlu2 %984  ;;  %v937_v26 = vpop.permute.xlu1 %936 }
 0x94f   :  { %v990_v27 = vsel %vm116_vm1, %v985_v25, 0  ;;  %v942_v28 = vsel %vm116_vm1, %v937_v26, 0  ;;  %1637 = vmatmul.msk.bf16.vlgmr.msrb.gmra.mxu3 %vm116_vm1, %v855_v0 }
 0x950   :  { %951 = vmatpush.bf16.xpose.msra.mxu0 %v942_v28  ;;  %999 = vmatpush.bf16.xpose.msra.mxu2 %v990_v27 }
 0x956   :  { %v1033_v5 = vpop.permute.xlu0 %1032 }
 0x957   :  { %v1038_v29 = vsel %vm116_vm1, %v1033_v5, 0  ;;  %1638 = vmatmul.msk.bf16.vlgmr.msra.gmra.mxu0 %vm116_vm1, %v856_v57  ;;  %1640 = vmatmul.msk.bf16.vlgmr.msra.gmra.mxu2 %vm116_vm1, %v858_v35 }
 0x958   :  { %1047 = vmatpush.bf16.xpose.msrb.mxu0 %v1038_v29 }
 0x95e   :  { %v961_v30 = vpop.permute.xlu2 %960  ;;  %v1150_v31 = vpop.permute.xlu0 %1149 }
 0x95f   :  { %v966_v32 = vsel %vm116_vm1, %v961_v30, 0  ;;  %v1155_v33 = vsel %vm405_vm2, %v1150_v31, 0 }
 0x960   :  { %975 = vmatpush.bf16.xpose.msra.mxu1 %v966_v32 }
 0x966   :  { %v1192_v34 = vpop.permute.xlu2 %1191 }
 0x967   :  { %1639 = vmatmul.msk.bf16.vlgmr.msra.gmra.mxu1 %vm116_vm1, %v857_v18  ;;  %1642 = vmatmul.msk.bf16.vlgmr.msrb.gmra.mxu0 %vm116_vm1, %v860_v61  ;;  %v1197_v38 = vsel %vm405_vm2, %v1192_v34, 0 }
 0x968   :  { %1164 = vmatpush.bf16.msrb.mxu1 %v1155_v33 }
 0x96e   :  { %v1009_v36 = vpop.permute.xlu1 %1008 }
 0x96f   :  { %v1014_v37 = vsel %vm116_vm1, %v1009_v36, 0 }
 0x970   :  { %1023 = vmatpush.bf16.xpose.msra.mxu3 %v1014_v37 }
 0x971   :  { %v881_v39 = vpop.f32.mrf.mxu1 }
 0x972   :  { %v882_v40 = vadd.f32 %v881_v39, %v1941_v52 }
 0x974   :  { %v1053_v44 = vsel %vm116_vm1, %v882_v40, -inf }
 0x975   :  { %1054 = vmax.xlane.f32.xlu0 %v1053_v44 }
 0x976   :  { %v1171_v45 = vpop.permute.xlu1 %1170 }
 0x977   :  { %v1176_v46 = vsel %vm405_vm2, %v1171_v45, 0  ;;  %1641 = vmatmul.msk.bf16.vlgmr.msra.gmra.mxu3 %vm116_vm1, %v859_v14 }
 0x978   :  { %1206 = vmatpush.bf16.msrb.mxu3 %v1197_v38  ;;  %1185 = vmatpush.bf16.msrb.mxu2 %v1176_v46 }
 0x979   :  { %v883_v48 = vpop.f32.mrf.mxu1 }
 0x989   :  { %1254 = vrot.lane.b32.xlu0 %v983_v11, %s1834_s12 }
 0x991   :  { %v905_v42 = vpop.f32.mrf.mxu2 }
 0x992   :  { %v906_v47 = vadd.f32 %v905_v42, %v1941_v52 }
 0x994   :  { %v1056_v49 = vsel %vm116_vm1, %v906_v47, -inf }
 0x995   :  { %1057 = vmax.xlane.f32.xlu1 %v1056_v49 }
 0x999   :  { %v907_v50 = vpop.f32.mrf.mxu2 }
 0x9d2   :  { %v929_v51 = vpop.f32.mrf.mxu3 }
 0x9d3   :  { %v930_v53 = vadd.f32 %v929_v51, %v1941_v52 }
 0x9d4   :  { %v953_v54 = vpop.f32.mrf.mxu0 }
 0x9d5   :  { %v1059_v55 = vsel %vm116_vm1, %v930_v53, -inf  ;;  %v954_v4 = vadd.f32 %v1800_v63, %v953_v54 }
 0x9d6   :  { %1060 = vmax.xlane.f32.xlu2 %v1059_v55 }
 0x9d7   :  { %v1062_v10 = vsel %vm116_vm1, %v954_v4, -inf }
 0x9da   :  { %v931_v56 = vpop.f32.mrf.mxu3  ;;  %v1001_v57 = vpop.f32.mrf.mxu2 }
 0x9db   :  { %v1002_v14 = vadd.f32 %v1800_v63, %v1001_v57 }
 0x9dc   :  { %v955_v58 = vpop.f32.mrf.mxu0 }
 0x9dd   :  { %v1068_v21 = vsel %vm116_vm1, %v1002_v14, -inf }
 0x9e2   :  { %v1003_v60 = vpop.f32.mrf.mxu2 }
 0x9e4   :  { %v977_v61 = vpop.f32.mrf.mxu1  ;;  %v1049_v62 = vpop.f32.mrf.mxu0 }
 0x9e5   :  { %v978_v0 = vadd.f32 %v1800_v63, %v977_v61  ;;  %v1050_v23 = vadd.f32 %v1800_v63, %v1049_v62 }
 0x9e7   :  { %v1065_v1 = vsel %vm116_vm1, %v978_v0, -inf  ;;  %v1074_v25 = vsel %vm116_vm1, %v1050_v23, -inf }
 0x9e8   :  { %1066 = vmax.xlane.f32.xlu1 %v1065_v1  ;;  %v1055_v2 = vpop.xlane.xlu0 %1054 }
 0x9e9   :  { %v1077_v52 = vsub.f32 %v882_v40, %v1055_v2 }
 0x9eb   :  { %v1085_v8 = vmul.f32 1.442695, %v1077_v52 }
 0x9ec   :  { %v979_v9 = vpop.f32.mrf.mxu1  ;;  %v1051_v35 = vpop.f32.mrf.mxu0 }
 0x9ed   :  { %1756 = vpow2.f32 %v1085_v8 }
 0x9f0   :  { %1063 = vmax.xlane.f32.xlu1 %v1062_v10 }
 0x9f3   :  { %v1757_v11 = vpop.eup %1756 }
 0x9f4   :  { %v1101_v13 = vsel %vm116_vm1, %v1757_v11, 0.0 }
 0x9f5   :  { %1102 = vadd.xlane.f32.xlu2 %v1101_v13 }
 0x9fa   :  { %v1025_v15 = vpop.f32.mrf.mxu3 }
 0x9fb   :  { %v1026_v16 = vadd.f32 %v1800_v63, %v1025_v15  ;;  %v1255_v18 = vpop.permute.xlu0 %1254 }
 0x9fc   :  { %v1260_v19 = vsel %vm405_vm2, %v1255_v18, 0 }
 0x9fd   :  { %1069 = vmax.xlane.f32.xlu2 %v1068_v21  ;;  %1269 = vmatpush.bf16.msra.mxu2 %v1260_v19  ;;  %v1071_v22 = vsel %vm116_vm1, %v1026_v16, -inf }
 0x9fe   :  { %1072 = vmax.xlane.f32.xlu0 %v1071_v22 }
 0xa02   :  { %v1027_v24 = vpop.f32.mrf.mxu3 }
 0xa05   :  { %1075 = vmax.xlane.f32.xlu2 %v1074_v25 }
 0xa08   :  { %v1058_v26 = vpop.xlane.xlu1 %1057 }
 0xa09   :  { %v1078_v27 = vsub.f32 %v906_v47, %v1058_v26  ;;  %1212 = vrot.lane.b32.xlu1 %v2084_v6, %s1834_s12 }
 0xa0b   :  { %v1087_v28 = vmul.f32 1.442695, %v1078_v27 }
 0xa0d   :  { %1758 = vpow2.f32 %v1087_v28 }
 0xa13   :  { %v1759_v5 = vpop.eup %1758 }
 0xa14   :  { %v1104_v29 = vsel %vm116_vm1, %v1759_v5, 0.0 }
 0xa15   :  { %1105 = vadd.xlane.f32.xlu0 %v1104_v29 }
 0xa49   :  { %v1061_v30 = vpop.xlane.xlu2 %1060 }
 0xa4a   :  { %v1079_v33 = vsub.f32 %v930_v53, %v1061_v30 }
 0xa4c   :  { %v1089_v36 = vmul.f32 1.442695, %v1079_v33 }
 0xa5b   :  { %v1067_v31 = vpop.xlane.xlu1 %1066 }
 0xa5c   :  { %v1081_v32 = vsub.f32 %v978_v0, %v1067_v31 }
 0xa5e   :  { %v1093_v34 = vmul.f32 1.442695, %v1081_v32 }
 0xa60   :  { %1760 = vpow2.f32 %v1093_v34 }
 0xa61   :  { %1762 = vpow2.f32 %v1089_v36 }
 0xa63   :  { %v1064_v37 = vpop.xlane.xlu1 %1063 }
 0xa64   :  { %v1080_v38 = vsub.f32 %v954_v4, %v1064_v37 }
 0xa66   :  { %v2144_v39 = vpop.eup %1760  ;;  %v1091_v40 = vmul.f32 1.442695, %v1080_v38 }
 0xa67   :  { %v1113_v6 = vsel %vm116_vm1, %v2144_v39, 0.0  ;;  %v1763_v45 = vpop.eup %1762 }
 0xa68   :  { %1764 = vpow2.f32 %v1091_v40  ;;  %1114 = vadd.xlane.f32.xlu1 %v1113_v6  ;;  %v1103_v44 = vpop.xlane.xlu2 %1102  ;;  %v1107_v42 = vsel %vm116_vm1, %v1763_v45, 0.0 }
 0xa69   :  { %1766 = vrcp.f32 %v1103_v44 }
 0xa6e   :  { %v1765_v46 = vpop.eup %1764 }
 0xa6f   :  { %v1767_v48 = vpop.eup %1766  ;;  %v1110_v47 = vsel %vm116_vm1, %v1765_v46, 0.0 }
 0xa70   :  { %v1133_v49 = vmul.f32 %v1767_v48, %v1757_v11  ;;  %1108 = vadd.xlane.f32.xlu1 %v1107_v42  ;;  %1111 = vadd.xlane.f32.xlu0 %v1110_v47  ;;  %v1070_v50 = vpop.xlane.xlu2 %1069 }
 0xa71   :  { %v1082_v51 = vsub.f32 %v1002_v14, %v1070_v50  ;;  %v1073_v53 = vpop.xlane.xlu0 %1072 }
 0xa72   :  { %v1141_v54 = vpack.c.bf16 %v1133_v49, %v1133_v49  ;;  %v1083_v55 = vsub.f32 %v1026_v16, %v1073_v53 }
 0xa73   :  { %v1095_v56 = vmul.f32 1.442695, %v1082_v51 }
 0xa74   :  { %v1097_v57 = vmul.f32 1.442695, %v1083_v55  ;;  %1643 = vmatmul.msk.bf16.vlgmr.msrb.gmra.mxu1 %vm116_vm1, %v1141_v54 }
 0xa75   :  { %1768 = vpow2.f32 %v1095_v56 }
 0xa76   :  { %1770 = vpow2.f32 %v1097_v57 }
 0xa78   :  { %v1076_v58 = vpop.xlane.xlu2 %1075 }
 0xa79   :  { %v1084_v60 = vsub.f32 %v1050_v23, %v1076_v58 }
 0xa7b   :  { %v1769_v61 = vpop.eup %1768  ;;  %v1099_v62 = vmul.f32 1.442695, %v1084_v60  ;;  %v1213_v63 = vpop.permute.xlu1 %1212 }
 0xa7c   :  { %v1771_v0 = vpop.eup %1770  ;;  %v1218_v1 = vsel %vm405_vm2, %v1213_v63, 0  ;;  %v1116_v2 = vsel %vm116_vm1, %v1769_v61, 0.0 }
 0xa7d   :  { %1772 = vpow2.f32 %v1099_v62  ;;  %1227 = vmatpush.bf16.msra.mxu0 %v1218_v1  ;;  %1117 = vadd.xlane.f32.xlu2 %v1116_v2  ;;  %v1119_v52 = vsel %vm116_vm1, %v1771_v0, 0.0 }
 0xa7e   :  { %1120 = vadd.xlane.f32.xlu0 %v1119_v52 }
 0xa83   :  { %v1773_v4 = vpop.eup %1772 }
 0xa84   :  { %v1122_v8 = vsel %vm116_vm1, %v1773_v4, 0.0 }
 0xa85   :  { %1123 = vadd.xlane.f32.xlu2 %v1122_v8 }
 0xa88   :  { %v1106_v9 = vpop.xlane.xlu0 %1105 }
 0xa89   :  { %1774 = vrcp.f32 %v1106_v9  ;;  %1233 = vrot.lane.b32.xlu1 %v2101_v20, %s1834_s12 }
 0xa8f   :  { %v1775_v35 = vpop.eup %1774 }
 0xa90   :  { %v1134_v10 = vmul.f32 %v1775_v35, %v1759_v5 }
 0xa92   :  { %v1142_v11 = vpack.c.bf16 %v1134_v10, %v1134_v10  ;;  %1296 = vrot.lane.b32.xlu0 %v2088_v7, %s1834_s12 }
 0xa94   :  { %1644 = vmatmul.msk.bf16.vlgmr.msrb.gmra.mxu2 %vm116_vm1, %v1142_v11 }
 0xa9a   :  { %1351 = vrot.lane.b32.xlu0 %v2056_v12, %s1835_s15 }
 0xa9d   :  { %1275 = vrot.lane.b32.xlu2 %v2097_v3, %s1834_s12 }
 0xadb   :  { %v1115_v13 = vpop.xlane.xlu1 %1114 }
 0xae3   :  { %v1109_v14 = vpop.xlane.xlu1 %1108  ;;  %v1112_v15 = vpop.xlane.xlu0 %1111 }
 0xae4   :  { %1776 = vrcp.f32 %v1109_v14 }
 0xae5   :  { %1778 = vrcp.f32 %v1112_v15 }
 0xae6   :  { %1780 = vrcp.f32 %v1115_v13 }
 0xaea   :  { %v1777_v20 = vpop.eup %1776 }
 0xaeb   :  { %v1779_v16 = vpop.eup %1778  ;;  %v1135_v18 = vmul.f32 %v1777_v20, %v1763_v45 }
 0xaec   :  { %v1136_v19 = vmul.f32 %v1779_v16, %v1765_v46  ;;  %v1781_v23 = vpop.eup %1780 }
 0xaed   :  { %v1143_v21 = vpack.c.bf16 %v1135_v18, %v1135_v18  ;;  %v1137_v28 = vmul.f32 %v1781_v23, %v2144_v39 }
 0xaee   :  { %v1144_v22 = vpack.c.bf16 %v1136_v19, %v1136_v19  ;;  %v2192_v19 = vld [vmem:[%s2246_s4 + $0x8] sm:$0x7f] }
 0xaef   :  { %1645 = vmatmul.msk.bf16.vlgmr.msrb.gmra.mxu3 %vm116_vm1, %v1143_v21  ;;  %v1145_v32 = vpack.c.bf16 %v1137_v28, %v1137_v28  ;;  %v1348_v21 = vperm.slane %v2192_v19, 0 }
 0xaf0   :  { %1646 = vmatmul.msk.bf16.vlgmr.msra.gmra.mxu0 %vm116_vm1, %v1144_v22  ;;  %v1118_v12 = vpop.xlane.xlu2 %1117 }
 0xaf1   :  { %1782 = vrcp.f32 %v1118_v12  ;;  %v2166_v7 = vpop.f32.mrf.mxu1  ;;  %v1121_v3 = vpop.xlane.xlu0 %1120 }
 0xaf2   :  { %1784 = vrcp.f32 %v1121_v3 }
 0xaf7   :  { %v1783_v24 = vpop.eup %1782 }
 0xaf8   :  { %v1138_v25 = vmul.f32 %v1783_v24, %v1769_v61  ;;  %v1124_v26 = vpop.xlane.xlu2 %1123  ;;  %v1785_v30 = vpop.eup %1784 }
 0xaf9   :  { %v1168_v27 = vpop.f32.mrf.mxu1  ;;  %1786 = vrcp.f32 %v1124_v26  ;;  %v1139_v33 = vmul.f32 %v1785_v30, %v1771_v0 }
 0xafa   :  { %v1146_v5 = vpack.c.bf16 %v1138_v25, %v1138_v25 }
 0xafb   :  { %v1234_v29 = vpop.permute.xlu1 %1233  ;;  %v1147_v38 = vpack.c.bf16 %v1139_v33, %v1139_v33 }
 0xafc   :  { %v1239_v31 = vsel %vm405_vm2, %v1234_v29, 0  ;;  %1648 = vmatmul.msk.bf16.vlgmr.msra.gmra.mxu2 %vm116_vm1, %v1146_v5 }
 0xafd   :  { %1248 = vmatpush.bf16.msra.mxu1 %v1239_v31 }
 0xaff   :  { %v1787_v34 = vpop.eup %1786 }
 0xb00   :  { %1647 = vmatmul.msk.bf16.vlgmr.msra.gmra.mxu1 %vm116_vm1, %v1145_v32  ;;  %v1276_v36 = vpop.permute.xlu2 %1275  ;;  %v1140_v39 = vmul.f32 %v1787_v34, %v1773_v4 }
 0xb01   :  { %v1281_v37 = vsel %vm405_vm2, %v1276_v36, 0  ;;  %v1656_v36 = vld [vmem:[#allocation2 + $0x38] sm:$0xf0] }
 0xb02   :  { %1290 = vmatpush.bf16.msra.mxu3 %v1281_v37  ;;  %v1148_v44 = vpack.c.bf16 %v1140_v39, %v1140_v39 }
 0xb04   :  { %v1297_v40 = vpop.permute.xlu0 %1296 }
 0xb05   :  { %v1302_v6 = vsel %vm405_vm2, %v1297_v40, 0  ;;  %1649 = vmatmul.msk.bf16.vlgmr.msra.gmra.mxu3 %vm116_vm1, %v1147_v38  ;;  %v1666_v40 = vld [vmem:[#allocation2 + $0x24] sm:$0xf] }
 0xb06   :  { %1311 = vmatpush.bf16.msrb.mxu0 %v1302_v6  ;;  %v1652_v6 = vld [vmem:[#allocation2 + $0x28] sm:$0xf0] }
 0xb09   :  { %1650 = vmatmul.msk.bf16.vlgmr.msrb.gmra.mxu0 %vm116_vm1, %v1148_v44 }
 0xb0c   :  { %v1352_v63 = vpop.permute.xlu0 %1351 }
 0xb0d   :  { %1364 = vmatpush.bf16.msrb.mxu1 %v1352_v63 }
 0xb17   :  { %v1187_v45 = vpop.f32.mrf.mxu2 }
 0xb1f   :  { %v1189_v46 = vpop.f32.mrf.mxu2 }
 0xb6d   :  { %v1229_v48 = vpop.f32.mrf.mxu0 }
 0xb72   :  { %v1208_v42 = vpop.f32.mrf.mxu3 }
 0xb73   :  { %v1697_v47 = vpack.i.bf16 %v1229_v48, %v1208_v42 }
 0xb75   :  { %v1231_v49 = vpop.f32.mrf.mxu0  ;;  %1698 = vrot.lane.b32.xlu2 %v1697_v47, %s1829_s27 }
 0xb7a   :  { %v1210_v50 = vpop.f32.mrf.mxu3 }
 0xb7d   :  { %v1250_v51 = vpop.f32.mrf.mxu1  ;;  %1349 = vrot.lane.b32.xlu2 %v2060_v17, %s1835_s15 }
 0xb7f   :  { %v1271_v53 = vpop.f32.mrf.mxu2 }
 0xb80   :  { %v1702_v54 = vpack.i.bf16 %v1271_v53, %v1250_v51 }
 0xb82   :  { %1703 = vrot.lane.b32.xlu1 %v1702_v54, %s1836_s16 }
 0xb85   :  { %v1252_v55 = vpop.f32.mrf.mxu1 }
 0xb86   :  { %v1313_v56 = vpop.f32.mrf.mxu0 }
 0xb87   :  { %v1273_v57 = vpop.f32.mrf.mxu2 }
 0xb88   :  { %v1292_v58 = vpop.f32.mrf.mxu3 }
 0xb89   :  { %v1707_v60 = vpack.i.bf16 %v1313_v56, %v1292_v58 }
 0xb8b   :  { %1708 = vrot.lane.b32.xlu0 %v1707_v60, %s1837_s17 }
 0xb8e   :  { %v1315_v61 = vpop.f32.mrf.mxu0 }
 0xb90   :  { %v1294_v62 = vpop.f32.mrf.mxu3 }
 0xb91   :  { %v1418_v62 = vperm.slane %v2192_v19, 3 }
 0xbcf   :  { %v1699_v0 = vpop.permute.xlu2 %1698 }
 0xbd0   :  { %v1701_v17 = vunpack.i.h.bf16 %v1699_v0  ;;  %v1700_v52 = vunpack.i.l.bf16 %v1699_v0 }
 0xbd2   :  { %v1342_v35 = vsel %vm116_vm1, %v1187_v45, %v1701_v17  ;;  %v1341_v10 = vsel %vm116_vm1, %v2166_v7, %v1700_v52  ;;  %v1655_v45 = vor.u32 %v1666_v40, %v1652_v6 }
 0xbd7   :  { %v1350_v1 = vpop.permute.xlu2 %1349 }
 0xbd8   :  { %1365 = vmatpush.bf16.msrb.mxu1 %v1350_v1 }
 0xbf4   :  { %v1704_v2 = vpop.permute.xlu1 %1703 }
 0xbf5   :  { %v1706_v4 = vunpack.i.h.bf16 %v1704_v2  ;;  %v1705_v8 = vunpack.i.l.bf16 %v1704_v2  ;;  %v1421_v2 = vperm.slane %v2192_v19, 4 }
 0xbf7   :  { %v1343_v14 = vsel %vm595_vm3, %v1341_v10, %v1705_v8  ;;  %v1344_v15 = vsel %vm595_vm3, %v1342_v35, %v1706_v4 }
 0xbfd   :  { %v1709_v9 = vpop.permute.xlu0 %1708 }
 0xbfe   :  { %v1711_v11 = vunpack.i.h.bf16 %v1709_v9  ;;  %v1710_v13 = vunpack.i.l.bf16 %v1709_v9 }
 0xc00   :  { %v1346_v20 = vsel %vm598_vm4, %v1344_v15, %v1711_v11  ;;  %v1345_v16 = vsel %vm598_vm4, %v1343_v14, %v1710_v13  ;;  %v1425_v14 = vperm.slane %v2192_v19, 1 }
 0xc01   :  { %v1347_v18 = vpack.c.bf16 %v1346_v20, %v1345_v16 }
 0xc03   :  { %1651 = vmatmul.msk.bf16.vlgmr.msrb.gmra.mxu1 %vm65_vm0, %v1347_v18 }
 0xc80   :  { %v1367_v22 = vpop.f32.mrf.mxu1 }
 0xc81   :  { %v1368_v12 = vadd.f32 %v1367_v22, %v1348_v21 }
 0xc83   :  { %v1372_v7 = vadd.f32 %v1368_v12, %v2066_v41  ;;  %v1454_v12 = vperm.slane %v2192_v19, 2 }
 0xc85   :  { %v1374_v3 = vsel %vm65_vm0, %v1372_v7, 0.0 }
 0xc86   :  { %1375 = vadd.xlane.f32.xlu1 %v1374_v3 }
 0xc88   :  { %v1369_v23 = vpop.f32.mrf.mxu1 }
 0xc89   :  { %v1370_v24 = vadd.f32 %v1369_v23, %v1348_v21 }
 0xc8b   :  { %v1373_v25 = vadd.f32 %v1370_v24, %v2068_v43  ;;  %v1668_v43 = vld [vmem:[#allocation2 + $0x34] sm:$0xf] }
 0xc8c   :  { %v1659_v37 = vor.u32 %v1668_v43, %v1656_v36 }
 0xc8d   :  { %v1377_v26 = vsel %vm65_vm0, %v1373_v25, 0.0 }
 0xc8e   :  { %1378 = vadd.xlane.f32.xlu0 %v1377_v26  ;;  %1443 = vmatpush.bf16.msrb.mxu2 %v1659_v37 }
 0xc92   :  { %1444 = vmatpush.bf16.msrb.mxu2 %v1655_v45 }
 0xca2   :  { %1457 = vrot.lane.b32.xlu0 %v1659_v37, %s1833_s11 }
 0xcf9   :  { %v1376_v27 = vpop.xlane.xlu1 %1375 }
 0xcfa   :  { %v1380_v28 = vmul.f32 %v1376_v27, %v2034_v59 }
 0xcfc   :  { %v1382_v5 = vsub.f32 %v1372_v7, %v1380_v28 }
 0xcfe   :  { %v1384_v29 = vmul.f32 %v1382_v5, %v1382_v5 }
 0xd00   :  { %v1386_v30 = vsel %vm65_vm0, %v1384_v29, 0.0 }
 0xd01   :  { %v1379_v31 = vpop.xlane.xlu0 %1378  ;;  %1387 = vadd.xlane.f32.xlu2 %v1386_v30 }
 0xd02   :  { %v1381_v41 = vmul.f32 %v1379_v31, %v2034_v59 }
 0xd04   :  { %v1383_v32 = vsub.f32 %v1373_v25, %v1381_v41 }
 0xd06   :  { %v1385_v33 = vmul.f32 %v1383_v32, %v1383_v32 }
 0xd08   :  { %v1389_v34 = vsel %vm65_vm0, %v1385_v33, 0.0 }
 0xd09   :  { %1390 = vadd.xlane.f32.xlu1 %v1389_v34 }
 0xd14   :  { %v1458_v10 = vpop.permute.xlu0 %1457 }
 0xd15   :  { %1470 = vmatpush.bf16.msrb.mxu3 %v1458_v10 }
 0xd19   :  { %1455 = vrot.lane.b32.xlu2 %v1655_v45, %s1833_s11 }
 0xd74   :  { %v1388_v38 = vpop.xlane.xlu2 %1387 }
 0xd75   :  { %v1392_v39 = vmul.f32 %v1388_v38, %v2034_v59 }
 0xd77   :  { %v1394_v44 = vadd.f32 1e-05, %v1392_v39 }
 0xd79   :  { %1788 = vrsqrt.f32 %v1394_v44  ;;  %vm1402_vm2 = vweird.f32 %v1394_v44 }
 0xd7c   :  { %v1391_v46 = vpop.xlane.xlu1 %1390  ;;  %v1456_v11 = vpop.permute.xlu2 %1455 }
 0xd7d   :  { %v1393_v48 = vmul.f32 %v1391_v46, %v2034_v59  ;;  %1471 = vmatpush.bf16.msrb.mxu3 %v1456_v11 }
 0xd7f   :  { %v1789_v42 = vpop.eup %1788  ;;  %v1395_v47 = vadd.f32 1e-05, %v1393_v48 }
 0xd80   :  { %v1397_v49 = vmul.f32 %v1789_v42, %v1394_v44  ;;  %vm1403_vm1 = vweird.f32 %v1789_v42 }
 0xd81   :  { %1790 = vrsqrt.f32 %v1395_v47  ;;  %vm1404_vm3 = vmor %vm1402_vm2, %vm1403_vm1  ;;  %vm1412_vm7 = vweird.f32 %v1395_v47 }
 0xd82   :  { %v1398_v50 = vmul.f32 %v1789_v42, %v1397_v49 }
 0xd84   :  { %v1399_v51 = vmul.f32 0.5, %v1398_v50 }
 0xd86   :  { %v1400_v53 = vsub.f32 1.5, %v1399_v51 }
 0xd87   :  { %v1791_v54 = vpop.eup %1790 }
 0xd88   :  { %v1401_v55 = vmul.f32 %v1789_v42, %v1400_v53  ;;  %v1407_v56 = vmul.f32 %v1791_v54, %v1395_v47  ;;  %vm1413_vm4 = vweird.f32 %v1791_v54  ;;  %v1524_v53 = vperm.slane %v2192_v19, 5 }
 0xd89   :  { %vm1414_vm8 = vmor %vm1412_vm7, %vm1413_vm4 }
 0xd8a   :  { %v1408_v57 = vmul.f32 %v1791_v54, %v1407_v56  ;;  %v1405_v58 = vsel %vm1404_vm3, %v1789_v42, %v1401_v55 }
 0xd8b   :  { %v1416_v63 = vmul.f32 %v1405_v58, %v1382_v5 }
 0xd8c   :  { %v1409_v60 = vmul.f32 0.5, %v1408_v57  ;;  %v1527_v57 = vperm.slane %v2192_v19, 6 }
 0xd8d   :  { %v1419_v17 = vmul.f32 %v1418_v62, %v1416_v63 }
 0xd8e   :  { %v1410_v61 = vsub.f32 1.5, %v1409_v60 }
 0xd8f   :  { %v1422_v8 = vadd.f32 %v1421_v2, %v1419_v17 }
 0xd90   :  { %v1411_v0 = vmul.f32 %v1791_v54, %v1410_v61 }
 0xd92   :  { %v1415_v1 = vsel %vm1414_vm8, %v1791_v54, %v1411_v0 }
 0xd93   :  { %v1417_v52 = vmul.f32 %v1415_v1, %v1383_v32 }
 0xd95   :  { %v1420_v4 = vmul.f32 %v1418_v62, %v1417_v52 }
 0xd97   :  { %v1423_v9 = vadd.f32 %v1421_v2, %v1420_v4 }
 0xd99   :  { %v1424_v35 = vpack.c.bf16 %v1423_v9, %v1422_v8 }
 0xd9b   :  { %1660 = vmatmul.msk.bf16.vlgmr.msrb.gmra.mxu2 %vm65_vm0, %v1424_v35 }
 0xe1e   :  { %v1446_v13 = vpop.f32.mrf.mxu2 }
 0xe1f   :  { %v1447_v15 = vadd.f32 %v1446_v13, %v1425_v14 }
 0xe21   :  { %v1451_v18 = vmax.f32 %v1447_v15, 0.0 }
 0xe26   :  { %v1448_v20 = vpop.f32.mrf.mxu2 }
 0xe27   :  { %v1449_v16 = vadd.f32 %v1448_v20, %v1425_v14 }
 0xe29   :  { %v1452_v21 = vmax.f32 %v1449_v16, 0.0 }
 0xe2b   :  { %v1453_v22 = vpack.c.bf16 %v1452_v21, %v1451_v18 }
 0xe2d   :  { %1661 = vmatmul.msk.bf16.vlgmr.msrb.gmra.mxu3 %vm65_vm0, %v1453_v22 }
 0xeb0   :  { %v1473_v7 = vpop.f32.mrf.mxu3 }
 0xeb1   :  { %v1474_v3 = vadd.f32 %v1473_v7, %v1454_v12 }
 0xeb3   :  { %v1478_v23 = vadd.f32 %v1474_v3, %v1422_v8 }
 0xeb5   :  { %v1480_v24 = vsel %vm65_vm0, %v1478_v23, 0.0 }
 0xeb6   :  { %1481 = vadd.xlane.f32.xlu1 %v1480_v24 }
 0xeb8   :  { %v1475_v25 = vpop.f32.mrf.mxu3 }
 0xeb9   :  { %v1476_v26 = vadd.f32 %v1475_v25, %v1454_v12 }
 0xebb   :  { %v1479_v27 = vadd.f32 %v1476_v26, %v1423_v9  ;;  %v1530_v26 = vld [vmem:[%s2247_s5] sm:$0x3] }
 0xebd   :  { %v1483_v28 = vsel %vm65_vm0, %v1479_v27, 0.0 }
 0xebe   :  { %1484 = vadd.xlane.f32.xlu1 %v1483_v28 }
 0xf29   :  { %v1482_v5 = vpop.xlane.xlu1 %1481 }
 0xf2a   :  { %v1486_v29 = vmul.f32 %v1482_v5, %v2034_v59 }
 0xf2c   :  { %v1488_v30 = vsub.f32 %v1478_v23, %v1486_v29 }
 0xf2e   :  { %v1490_v31 = vmul.f32 %v1488_v30, %v1488_v30 }
 0xf30   :  { %v1492_v41 = vsel %vm65_vm0, %v1490_v31, 0.0 }
 0xf31   :  { %1493 = vadd.xlane.f32.xlu1 %v1492_v41  ;;  %v1485_v32 = vpop.xlane.xlu1 %1484  ;;  %v1578_v41 = vperm.slane %v1530_v26, 1 }
 0xf32   :  { %v1487_v33 = vmul.f32 %v1485_v32, %v2034_v59 }
 0xf34   :  { %v1489_v34 = vsub.f32 %v1479_v27, %v1487_v33 }
 0xf36   :  { %v1491_v43 = vmul.f32 %v1489_v34, %v1489_v34 }
 0xf38   :  { %v1495_v36 = vsel %vm65_vm0, %v1491_v43, 0.0 }
 0xf39   :  { %1496 = vadd.xlane.f32.xlu0 %v1495_v36 }
 0xfa4   :  { %v1494_v37 = vpop.xlane.xlu1 %1493 }
 0xfa5   :  { %v1498_v38 = vmul.f32 %v1494_v37, %v2034_v59 }
 0xfa7   :  { %v1500_v39 = vadd.f32 1e-05, %v1498_v38 }
 0xfa9   :  { %1792 = vrsqrt.f32 %v1500_v39  ;;  %vm1508_vm10 = vweird.f32 %v1500_v39 }
 0xfac   :  { %v1497_v40 = vpop.xlane.xlu0 %1496 }
 0xfad   :  { %v1499_v6 = vmul.f32 %v1497_v40, %v2034_v59 }
 0xfaf   :  { %v1793_v44 = vpop.eup %1792  ;;  %v1501_v45 = vadd.f32 1e-05, %v1499_v6 }
 0xfb0   :  { %v1503_v46 = vmul.f32 %v1793_v44, %v1500_v39  ;;  %vm1509_vm9 = vweird.f32 %v1793_v44 }
 0xfb1   :  { %1794 = vrsqrt.f32 %v1501_v45  ;;  %vm1510_vm11 = vmor %vm1508_vm10, %vm1509_vm9  ;;  %vm1518_vm13 = vweird.f32 %v1501_v45 }
 0xfb2   :  { %v1504_v48 = vmul.f32 %v1793_v44, %v1503_v46 }
 0xfb4   :  { %v1505_v42 = vmul.f32 0.5, %v1504_v48 }
 0xfb6   :  { %v1506_v47 = vsub.f32 1.5, %v1505_v42 }
 0xfb7   :  { %v1795_v49 = vpop.eup %1794 }
 0xfb8   :  { %v1507_v50 = vmul.f32 %v1793_v44, %v1506_v47  ;;  %v1513_v51 = vmul.f32 %v1795_v49, %v1501_v45  ;;  %vm1519_vm12 = vweird.f32 %v1795_v49 }
 0xfb9   :  { %vm1520_vm14 = vmor %vm1518_vm13, %vm1519_vm12 }
 0xfba   :  { %v1514_v54 = vmul.f32 %v1795_v49, %v1513_v51  ;;  %v1511_v55 = vsel %vm1510_vm11, %v1793_v44, %v1507_v50 }
 0xfbb   :  { %v1522_v56 = vmul.f32 %v1511_v55, %v1488_v30  ;;  %v1575_v30 = vperm.slane %v1530_v26, 0 }
 0xfbc   :  { %v1515_v58 = vmul.f32 0.5, %v1514_v54 }
 0xfbd   :  { %v1525_v60 = vmul.f32 %v1524_v53, %v1522_v56 }
 0xfbe   :  { %v1516_v61 = vsub.f32 1.5, %v1515_v58 }
 0xfbf   :  { %v1528_v62 = vadd.f32 %v1527_v57, %v1525_v60 }
 0xfc0   :  { %v1517_v63 = vmul.f32 %v1795_v49, %v1516_v61 }
 0xfc1   :  { %v1531_v0 = vsel %vm65_vm0, %v1528_v62, 0.0 }
 0xfc2   :  { %1532 = vadd.xlane.f32.xlu2 %v1531_v0  ;;  %v1521_v1 = vsel %vm1520_vm14, %v1795_v49, %v1517_v63 }
 0xfc3   :  { %v1523_v2 = vmul.f32 %v1521_v1, %v1489_v34 }
 0xfc5   :  { %v1526_v17 = vmul.f32 %v1524_v53, %v1523_v2 }
 0xfc7   :  { %v1529_v52 = vadd.f32 %v1527_v57, %v1526_v17 }
 0xfc9   :  { %v1534_v4 = vsel %vm65_vm0, %v1529_v52, 0.0 }
 0xfca   :  { %1535 = vadd.xlane.f32.xlu1 %v1534_v4 }
0x1035   :  { %v1533_v8 = vpop.xlane.xlu2 %1532 }
0x1036   :  { %v1537_v19 = vmul.f32 %v1533_v8, %v2034_v59 }
0x1038   :  { %v1539_v9 = vsub.f32 %v1528_v62, %v1537_v19 }
0x103a   :  { %v1541_v35 = vmul.f32 %v1539_v9, %v1539_v9 }
0x103c   :  { %v1543_v10 = vsel %vm65_vm0, %v1541_v35, 0.0 }
0x103d   :  { %1544 = vadd.xlane.f32.xlu1 %v1543_v10  ;;  %v1536_v11 = vpop.xlane.xlu1 %1535 }
0x103e   :  { %v1538_v13 = vmul.f32 %v1536_v11, %v2034_v59 }
0x1040   :  { %v1540_v14 = vsub.f32 %v1529_v52, %v1538_v13 }
0x1042   :  { %v1542_v15 = vmul.f32 %v1540_v14, %v1540_v14 }
0x1044   :  { %v1546_v20 = vsel %vm65_vm0, %v1542_v15, 0.0 }
0x1045   :  { %1547 = vadd.xlane.f32.xlu1 %v1546_v20 }
0x10b0   :  { %v1545_v16 = vpop.xlane.xlu1 %1544 }
0x10b1   :  { %v1549_v18 = vmul.f32 %v1545_v16, %v2034_v59 }
0x10b3   :  { %v1551_v21 = vadd.f32 1e-05, %v1549_v18 }
0x10b5   :  { %1796 = vrsqrt.f32 %v1551_v21  ;;  %vm1559_vm5 = vweird.f32 %v1551_v21 }
0x10b8   :  { %v1548_v22 = vpop.xlane.xlu1 %1547 }
0x10b9   :  { %v1550_v12 = vmul.f32 %v1548_v22, %v2034_v59 }
0x10bb   :  { %v1797_v7 = vpop.eup %1796  ;;  %v1552_v3 = vadd.f32 1e-05, %v1550_v12 }
0x10bc   :  { %v1554_v23 = vmul.f32 %v1797_v7, %v1551_v21  ;;  %vm1560_vm15 = vweird.f32 %v1797_v7 }
0x10bd   :  { %1798 = vrsqrt.f32 %v1552_v3  ;;  %vm1561_vm6 = vmor %vm1559_vm5, %vm1560_vm15  ;;  %vm1569_vm2 = vweird.f32 %v1552_v3 }
0x10be   :  { %v1555_v24 = vmul.f32 %v1797_v7, %v1554_v23 }
0x10c0   :  { %v1556_v25 = vmul.f32 0.5, %v1555_v24 }
0x10c2   :  { %v1557_v27 = vsub.f32 1.5, %v1556_v25 }
0x10c3   :  { %v1799_v28 = vpop.eup %1798 }
0x10c4   :  { %v1558_v5 = vmul.f32 %v1797_v7, %v1557_v27  ;;  %v1564_v29 = vmul.f32 %v1799_v28, %v1552_v3  ;;  %vm1570_vm1 = vweird.f32 %v1799_v28 }
0x10c5   :  { %vm1571_vm3 = vmor %vm1569_vm2, %vm1570_vm1 }
0x10c6   :  { %v1562_v31 = vsel %vm1561_vm6, %v1797_v7, %v1558_v5  ;;  %v1565_v59 = vmul.f32 %v1799_v28, %v1564_v29 }
0x10c7   :  { %v1573_v32 = vmul.f32 %v1562_v31, %v1539_v9 }
0x10c8   :  { %v1566_v33 = vmul.f32 0.5, %v1565_v59 }
0x10c9   :  { %v1576_v34 = vmul.f32 %v1575_v30, %v1573_v32 }
0x10ca   :  { %v1567_v43 = vsub.f32 1.5, %v1566_v33 }
0x10cb   :  { %v1579_v36 = vadd.f32 %v1578_v41, %v1576_v34 }
0x10cc   :  { %v1568_v37 = vmul.f32 %v1799_v28, %v1567_v43 }
0x10cd   :  { %1581 = vst.msk [vmem:[%s2248_s6] sm:$0xff] %vm65_vm0, %v1579_v36 }
0x10ce   :  { %v1572_v38 = vsel %vm1571_vm3, %v1799_v28, %v1568_v37 }
0x10cf   :  { %v1574_v39 = vmul.f32 %v1572_v38, %v1540_v14 }
0x10d1   :  { %v1577_v40 = vmul.f32 %v1575_v30, %v1574_v39 }
0x10d3   :  { %v1580_v6 = vadd.f32 %v1578_v41, %v1577_v40 }
0x10d5   :  { %1582 = vst.msk [vmem:[%s2248_s6 + $0x8] sm:$0xff] %vm65_vm0, %v1580_v6 }
0x10d6   :  { %1587 = vsyncpa [#allocation3], 1 }

</bundles_post_ra>
